<compile_context>
chip_gen: v6e
topology: v6e:2x2x1
jax: 0.10.0
libtpu: 0.0.40
codegen_flags: <defaults>
</compile_context>

<pallas_src>
import functools

import jax
import jax.numpy as jnp
from jax.experimental import pallas as pl
from jax.experimental.pallas import tpu as pltpu


# ----------------------------- Pallas kernel --------------------------------

def lnet_kernel(x_ref, masks_ref, w1_ref, w2_ref, b2_ref, pool_ref,
                cls_w_ref, cls_b_ref, out_ref):
    x = x_ref[0]                                   # (1, N), N = TB * L
    N = x.shape[1]

    # Grid-invariant per-element boundary masks, built once in the wrapper.
    # NOTE: masking by multiplication assumes finite inputs (inf * 0 = NaN).
    not_first = masks_ref[0:1]                     # seq pos 0       left pad
    not_last1 = masks_ref[1:2]                     # stage-1 right   pad
    not_last2 = masks_ref[2:3]                     # stage-2 right   pad

    # ---- Stage 1: DeepMax(1 -> c1): DSC + MFM + MaxPool(2,2) ---------------
    # Depthwise (Cin == 1) pre-folded into the pointwise weights w1[:, :3]
    # and the fused bias w1[:, 3]; Cin == 1 so this is 4 broadcast FMAs (VPU).
    xl = pltpu.roll(x, shift=1, axis=1) * not_first        # x[t-1]
    xr = pltpu.roll(x, shift=N - 1, axis=1) * not_last1    # x[t+1]
    w1 = w1_ref[...]                                       # (2*c1, 4)
    z1 = w1[:, 0:1] * xl + w1[:, 1:2] * x + w1[:, 2:3] * xr + w1[:, 3:4]
    c1 = z1.shape[0] // 2
    m1 = jnp.maximum(z1[:c1], z1[c1:])                     # MFM -> (c1, N)
    # MaxPool(2,2): pooled value lands on even lanes; odd lanes hold junk that
    # is never used downstream (roll wrap at lane N-1 is odd -> discarded).
    p1 = jnp.maximum(m1, pltpu.roll(m1, shift=N - 1, axis=1))

    # ---- Stage 2: DeepMax(c1 -> c2), depthwise folded into the matmul ------
    # Neighbors at lane stride 2 (the stage-2 sequence lives on even lanes).
    l2 = pltpu.roll(p1, shift=2, axis=1) * not_first       # seq neighbor s-1
    r2 = pltpu.roll(p1, shift=N - 2, axis=1) * not_last2   # seq neighbor s+1
    stacked = jnp.concatenate([l2, p1, r2], axis=0)        # (3*c1, N)
    z2 = (jnp.dot(w2_ref[...], stacked,                    # K = 3*c1 on MXU
                  preferred_element_type=jnp.float32)
          + b2_ref[...])                                   # (2*c2, N)
    c2 = z2.shape[0] // 2
    m2 = jnp.maximum(z2[:c2], z2[c2:])                     # MFM -> (c2, N)
    # MaxPool(2,2) at lane stride 2: valid lanes are multiples of 4 inside
    # each element's L-lane segment.
    p2 = jnp.maximum(m2, pltpu.roll(m2, shift=N - 2, axis=1))

    # ---- AdaptiveAvgPool1d(1): segmented mean, standard (M,K)@(K,N) matmul -
    # pool_ref is (N, TB): 4/L on each element's valid (t % 4 == 0) lanes,
    # zero elsewhere -> junk lanes masked here; big operand fed un-transposed.
    feat_t = jnp.dot(p2, pool_ref[...],
                     preferred_element_type=jnp.float32)   # (c2, TB)
    feat = feat_t.T                                        # small XLU transpose

    # ---- Classifier (eval-mode BatchNorm pre-folded; columns padded to 128)
    logits = (jnp.dot(feat, cls_w_ref[...],
                      preferred_element_type=jnp.float32)
              + cls_b_ref[...])                            # (TB, NCpad)
    out_ref[0] = logits                                    # lane-dense store


# ------------------------------- wrapper -------------------------------------

def _full_spec(a):
    nd = a.ndim
    return pl.BlockSpec(a.shape, lambda i, _nd=nd: (0,) * _nd)


@functools.partial(jax.jit,
                   static_argnames=("num_features", "num_classes",
                                    "block_batch"))
def lnet_forward(x, params, *, num_features, num_classes, block_batch=None):
    B = x.shape[0]
    L = num_features
    assert L % 4 == 0, "num_features must be divisible by 4 (two MaxPool(2))"

    if block_batch is None:
        # Aim for ~>=4096 lanes per grid step (big tiles amortize the ~0.35us
        # per-step cost and fill the MXU M dim), but keep the (N, TB) pool
        # matrix (quadratic in TB) <= 4 MiB so total VMEM stays well inside
        # the 48 MiB budget below even on v7x (64 MiB physical VMEM).
        tb = max(8, -(-4096 // L))
        while tb > 8 and tb * tb * L * 4 > (4 << 20):
            tb //= 2
        block_batch = min(tb, 256)

    # On v7x, prefer an even grid trip-count (nb) so the "parallel" axis
    # shards across both TensorCores; on v5e/v6e fewest/largest steps win.
    TB = max(1, min(block_batch, B))
    Bp = -(-B // TB) * TB                       # pad batch to a multiple of TB
    nb = Bp // TB
    N = TB * L

    x2 = x.reshape(B, L).astype(jnp.float32)
    if Bp != B:
        x2 = jnp.concatenate([x2, jnp.zeros((Bp - B, L), jnp.float32)], axis=0)
    x_flat = x2.reshape(nb, 1, N)               # TB elements per row, on lanes

    eps = 1e-5
    bn_scale = params["bn_gamma"] / jnp.sqrt(params["bn_var"] + eps)   # (c2,)
    bn_shift = params["bn_beta"] - params["bn_mean"] * bn_scale        # (c2,)

    # Fold stage-1 depthwise conv (Cin == 1) into the stage-1 pointwise conv.
    w1_taps = params["pw1_w"] * params["dw1_w"]                        # (2c1,3)
    w1_bias = params["pw1_w"][:, 0] * params["dw1_b"][0] + params["pw1_b"]
    w1 = jnp.concatenate([w1_taps, w1_bias[:, None]], axis=1)          # (2c1,4)

    # Fold stage-2 depthwise taps into the pointwise matmul: K = 3*c1.
    pw2_w = params["pw2_w"]                                            # (2c2,c1)
    dw2_w = params["dw2_w"]                                            # (c1, 3)
    w2 = jnp.concatenate([pw2_w * dw2_w[:, 0],                         # left
                          pw2_w * dw2_w[:, 1],                         # center
                          pw2_w * dw2_w[:, 2]], axis=1)                # right
    b2 = (params["pw2_b"] + pw2_w @ params["dw2_b"])[:, None]          # (2c2,1)

    # Fold eval-mode BatchNorm into the classifier (commutes with mean-pool),
    # and pad the output columns to a lane-dense multiple of 128.
    cls_w_eff = params["cls_w"] * bn_scale[None, :]                    # (NC,c2)
    cls_b_eff = params["cls_w"] @ bn_shift + params["cls_b"]           # (NC,)
    c2 = cls_w_eff.shape[1]
    NCpad = -(-num_classes // 128) * 128
    cls_w_pad = (jnp.zeros((c2, NCpad), jnp.float32)
                 .at[:, :num_classes].set(cls_w_eff.T))                # (c2,NCpad)
    cls_b_pad = (jnp.zeros((1, NCpad), jnp.float32)
                 .at[0, :num_classes].set(cls_b_eff))                  # (1,NCpad)

    # Grid-invariant boundary masks, built once (DMA'd once, reused per step).
    lane_mod = jnp.arange(N, dtype=jnp.int32) % L
    masks = jnp.stack([lane_mod != 0,
                       lane_mod != L - 1,
                       lane_mod != L - 2]).astype(jnp.float32)         # (3, N)

    # Segmented-mean matrix in standard (K, M) = (N, TB) orientation: selects
    # each element's valid pooled lanes (t % 4 == 0) and averages the L/4 of
    # them.  Linear in L, quadratic only in TB (kept small above).
    t = jnp.arange(N)
    pool = (((t[:, None] // L) == jnp.arange(TB)[None, :])
            & ((t[:, None] % 4) == 0)).astype(jnp.float32) * (4.0 / L)

    weights = (
        masks,                                # (3, N)
        w1,                                   # (2*c1, 4)
        w2,                                   # (2*c2, 3*c1)
        b2,                                   # (2*c2, 1)
        pool,                                 # (N, TB)
        cls_w_pad,                            # (c2, NCpad)
        cls_b_pad,                            # (1, NCpad)
    )

    out = pl.pallas_call(
        lnet_kernel,
        out_shape=jax.ShapeDtypeStruct((nb, TB, NCpad), jnp.float32),
        grid=(nb,),
        in_specs=[pl.BlockSpec((1, 1, N), lambda i: (i, 0, 0))]
                 + [_full_spec(w) for w in weights],
        out_specs=pl.BlockSpec((1, TB, NCpad), lambda i: (i, 0, 0)),
        compiler_params=pltpu.CompilerParams(
            dimension_semantics=("parallel",),
            vmem_limit_bytes=48 * 1024 * 1024),   # safe on v7x (64 MiB phys)
    )(x_flat, *weights)
    return out.reshape(Bp, NCpad)[:B, :num_classes]


# ---------------------------- pure-JAX reference ------------------------------

def lnet_reference(x, params, *, num_features):
    B = x.shape[0]
    h = x.reshape(B, 1, num_features).astype(jnp.float32)

    def dsc(h, dw_w, dw_b, pw_w, pw_b):
        C = h.shape[1]
        h = jax.lax.conv_general_dilated(
            h, dw_w[:, None, :], window_strides=(1,), padding=[(1, 1)],
            dimension_numbers=("NCH", "OIH", "NCH"), feature_group_count=C)
        h = h + dw_b[None, :, None]
        h = jax.lax.conv_general_dilated(
            h, pw_w[:, :, None], window_strides=(1,), padding=[(0, 0)],
            dimension_numbers=("NCH", "OIH", "NCH"))
        return h + pw_b[None, :, None]

    def deepmax(h, dw_w, dw_b, pw_w, pw_b):
        z = dsc(h, dw_w, dw_b, pw_w, pw_b)
        c = z.shape[1] // 2
        m = jnp.maximum(z[:, :c], z[:, c:])
        return jax.lax.reduce_window(m, -jnp.inf, jax.lax.max,
                                     (1, 1, 2), (1, 1, 2), "VALID")

    h = deepmax(h, params["dw1_w"], params["dw1_b"],
                params["pw1_w"], params["pw1_b"])
    h = deepmax(h, params["dw2_w"], params["dw2_b"],
                params["pw2_w"], params["pw2_b"])
    h = (h - params["bn_mean"][None, :, None]) / jnp.sqrt(
        params["bn_var"][None, :, None] + 1e-5)
    h = h * params["bn_gamma"][None, :, None] + params["bn_beta"][None, :, None]
    h = jnp.mean(h, axis=2)
    return h @ params["cls_w"].T + params["cls_b"][None, :]


# --------------------------------- main ---------------------------------------

def init_params(key, out_channels, num_classes):
    c1, c2 = out_channels, 2 * out_channels
    ks = jax.random.split(key, 12)
    p = {
        # DeepMax 1: DSC(1 -> 2*c1)
        "dw1_w": 0.3 * jax.random.normal(ks[0], (1, 3), jnp.float32),
        "dw1_b": 0.1 * jax.random.normal(ks[1], (1,), jnp.float32),
        "pw1_w": 0.3 * jax.random.normal(ks[2], (2 * c1, 1), jnp.float32),
        "pw1_b": 0.1 * jax.random.normal(ks[3], (2 * c1,), jnp.float32),
        # DeepMax 2: DSC(c1 -> 2*c2)
        "dw2_w": 0.3 * jax.random.normal(ks[4], (c1, 3), jnp.float32),
        "dw2_b": 0.1 * jax.random.normal(ks[5], (c1,), jnp.float32),
        "pw2_w": 0.2 * jax.random.normal(ks[6], (2 * c2, c1), jnp.float32),
        "pw2_b": 0.1 * jax.random.normal(ks[7], (2 * c2,), jnp.float32),
        # BatchNorm1d(c2), eval-mode running stats
        "bn_gamma": 1.0 + 0.1 * jax.random.normal(ks[8], (c2,), jnp.float32),
        "bn_beta": 0.1 * jax.random.normal(ks[9], (c2,), jnp.float32),
        "bn_mean": 0.1 * jax.random.normal(ks[10], (c2,), jnp.float32),
        "bn_var": jnp.abs(1.0 + 0.1 * jax.random.normal(ks[11], (c2,),
                                                        jnp.float32)),
        # classifier
        "cls_w": None, "cls_b": None,
    }
    kw, kb = jax.random.split(ks[0])
    p["cls_w"] = 0.2 * jax.random.normal(kw, (num_classes, c2), jnp.float32)
    p["cls_b"] = 0.1 * jax.random.normal(kb, (num_classes,), jnp.float32)
    return p


if __name__ == "__main__":
    B, NUM_FEATURES, OUT_CHANNELS, NUM_CLASSES = 12, 64, 32, 10

    key = jax.random.PRNGKey(0)
    kx, kp = jax.random.split(key)
    x = jax.random.normal(kx, (B, NUM_FEATURES), jnp.float32)
    params = init_params(kp, OUT_CHANNELS, NUM_CLASSES)

    ref = lnet_reference(x, params, num_features=NUM_FEATURES)

    # Explicit small block: 2 grid steps + batch padding path exercised.
    out = lnet_forward(x, params, num_features=NUM_FEATURES,
                       num_classes=NUM_CLASSES, block_batch=8)
    out = jax.block_until_ready(out)
    assert out.shape == (B, NUM_CLASSES), out.shape
    assert jnp.allclose(out, ref, atol=1e-4, rtol=1e-4), (
        "mismatch vs reference (block_batch=8): max abs err = "
        f"{float(jnp.max(jnp.abs(out - ref)))}")

    # Auto-sized block (the production default: one large lane-dense step).
    out2 = jax.block_until_ready(
        lnet_forward(x, params, num_features=NUM_FEATURES,
                     num_classes=NUM_CLASSES))
    assert jnp.allclose(out2, ref, atol=1e-4, rtol=1e-4), (
        "mismatch vs reference (auto block): max abs err = "
        f"{float(jnp.max(jnp.abs(out2 - ref)))}")

    print("KERNEL_OK")
</pallas_src>

<mosaic_0001>
module attributes {stable_mosaic.version = 11 : i64} {
  func.func @lnet_kernel(%arg0: i32, %arg1: memref<1x1x512xf32, #tpu.memory_space<vmem>>, %arg2: memref<3x512xf32, #tpu.memory_space<vmem>>, %arg3: memref<64x4xf32, #tpu.memory_space<vmem>>, %arg4: memref<128x96xf32, #tpu.memory_space<vmem>>, %arg5: memref<128x1xf32, #tpu.memory_space<vmem>>, %arg6: memref<512x8xf32, #tpu.memory_space<vmem>>, %arg7: memref<64x128xf32, #tpu.memory_space<vmem>>, %arg8: memref<1x128xf32, #tpu.memory_space<vmem>>, %arg9: memref<1x8x128xf32, #tpu.memory_space<vmem>>) attributes {dimension_semantics = [#tpu.dimension_semantics<parallel>], iteration_bounds = array<i64: 2>, scalar_prefetch = 0 : i64, scratch_operands = 0 : i64, tpu.core_type = #tpu.core_type<tc>, window_params = [{transform_indices = @transform_0, window_bounds = array<i64: 1, 1, 512>}, {pipeline_mode = #tpu.pipeline_mode<synchronous>, transform_indices = @transform_1, window_bounds = array<i64: 3, 512>}, {pipeline_mode = #tpu.pipeline_mode<synchronous>, transform_indices = @transform_2, window_bounds = array<i64: 64, 4>}, {pipeline_mode = #tpu.pipeline_mode<synchronous>, transform_indices = @transform_3, window_bounds = array<i64: 128, 96>}, {pipeline_mode = #tpu.pipeline_mode<synchronous>, transform_indices = @transform_4, window_bounds = array<i64: 128, 1>}, {pipeline_mode = #tpu.pipeline_mode<synchronous>, transform_indices = @transform_5, window_bounds = array<i64: 512, 8>}, {pipeline_mode = #tpu.pipeline_mode<synchronous>, transform_indices = @transform_6, window_bounds = array<i64: 64, 128>}, {pipeline_mode = #tpu.pipeline_mode<synchronous>, transform_indices = @transform_7, window_bounds = array<i64: 1, 128>}, {transform_indices = @transform_8, window_bounds = array<i64: 1, 8, 128>}]} {
    %c0 = arith.constant 0 : index
    %c0_0 = arith.constant 0 : index
    %c0_1 = arith.constant 0 : index
    %0 = vector.load %arg1[%c0, %c0_0, %c0_1] : memref<1x1x512xf32, #tpu.memory_space<vmem>>, vector<1x1x512xf32>
    %1 = vector.shape_cast %0 : vector<1x1x512xf32> to vector<1x512xf32>
    %c0_2 = arith.constant 0 : index
    %c0_3 = arith.constant 0 : index
    %2 = vector.load %arg2[%c0_2, %c0_3] : memref<3x512xf32, #tpu.memory_space<vmem>>, vector<1x512xf32>
    %c1 = arith.constant 1 : index
    %c0_4 = arith.constant 0 : index
    %3 = vector.load %arg2[%c1, %c0_4] : memref<3x512xf32, #tpu.memory_space<vmem>>, vector<1x512xf32>
    %c2 = arith.constant 2 : index
    %c0_5 = arith.constant 0 : index
    %4 = vector.load %arg2[%c2, %c0_5] : memref<3x512xf32, #tpu.memory_space<vmem>>, vector<1x512xf32>
    %c1_i32 = arith.constant 1 : i32
    %5 = tpu.dynamic_rotate %1 by %c1_i32 dim 1 : vector<1x512xf32>, i32 -> vector<1x512xf32>
    %6 = arith.mulf %5, %2 : vector<1x512xf32>
    %c511_i32 = arith.constant 511 : i32
    %7 = tpu.dynamic_rotate %1 by %c511_i32 dim 1 : vector<1x512xf32>, i32 -> vector<1x512xf32>
    %8 = arith.mulf %7, %3 : vector<1x512xf32>
    %c0_6 = arith.constant 0 : index
    %c0_7 = arith.constant 0 : index
    %9 = vector.load %arg3[%c0_6, %c0_7] : memref<64x4xf32, #tpu.memory_space<vmem>>, vector<64x4xf32>
    %10 = vector.extract_strided_slice %9 {offsets = [0, 0], sizes = [64, 1], strides = [1, 1]} : vector<64x4xf32> to vector<64x1xf32>
    %11 = vector.broadcast %10 : vector<64x1xf32> to vector<64x512xf32>
    %12 = vector.broadcast %6 : vector<1x512xf32> to vector<64x512xf32>
    %13 = arith.mulf %11, %12 : vector<64x512xf32>
    %14 = vector.extract_strided_slice %9 {offsets = [0, 1], sizes = [64, 1], strides = [1, 1]} : vector<64x4xf32> to vector<64x1xf32>
    %15 = vector.broadcast %14 : vector<64x1xf32> to vector<64x512xf32>
    %16 = vector.broadcast %1 : vector<1x512xf32> to vector<64x512xf32>
    %17 = arith.mulf %15, %16 : vector<64x512xf32>
    %18 = arith.addf %13, %17 : vector<64x512xf32>
    %19 = vector.extract_strided_slice %9 {offsets = [0, 2], sizes = [64, 1], strides = [1, 1]} : vector<64x4xf32> to vector<64x1xf32>
    %20 = vector.broadcast %19 : vector<64x1xf32> to vector<64x512xf32>
    %21 = vector.broadcast %8 : vector<1x512xf32> to vector<64x512xf32>
    %22 = arith.mulf %20, %21 : vector<64x512xf32>
    %23 = arith.addf %18, %22 : vector<64x512xf32>
    %24 = vector.extract_strided_slice %9 {offsets = [0, 3], sizes = [64, 1], strides = [1, 1]} : vector<64x4xf32> to vector<64x1xf32>
    %25 = vector.broadcast %24 : vector<64x1xf32> to vector<64x512xf32>
    %26 = arith.addf %23, %25 : vector<64x512xf32>
    %27 = vector.extract_strided_slice %26 {offsets = [0, 0], sizes = [32, 512], strides = [1, 1]} : vector<64x512xf32> to vector<32x512xf32>
    %28 = vector.extract_strided_slice %26 {offsets = [32, 0], sizes = [32, 512], strides = [1, 1]} : vector<64x512xf32> to vector<32x512xf32>
    %29 = arith.maximumf %27, %28 : vector<32x512xf32>
    %c511_i32_8 = arith.constant 511 : i32
    %30 = tpu.dynamic_rotate %29 by %c511_i32_8 dim 1 : vector<32x512xf32>, i32 -> vector<32x512xf32>
    %31 = arith.maximumf %29, %30 : vector<32x512xf32>
    %c2_i32 = arith.constant 2 : i32
    %32 = tpu.dynamic_rotate %31 by %c2_i32 dim 1 : vector<32x512xf32>, i32 -> vector<32x512xf32>
    %33 = vector.broadcast %2 : vector<1x512xf32> to vector<32x512xf32>
    %34 = arith.mulf %32, %33 : vector<32x512xf32>
    %c510_i32 = arith.constant 510 : i32
    %35 = tpu.dynamic_rotate %31 by %c510_i32 dim 1 : vector<32x512xf32>, i32 -> vector<32x512xf32>
    %36 = vector.broadcast %4 : vector<1x512xf32> to vector<32x512xf32>
    %37 = arith.mulf %35, %36 : vector<32x512xf32>
    %38 = tpu.concatenate %34, %31, %37 in 0 : vector<32x512xf32>, vector<32x512xf32>, vector<32x512xf32> -> vector<96x512xf32>
    %c0_9 = arith.constant 0 : index
    %c0_10 = arith.constant 0 : index
    %39 = vector.load %arg4[%c0_9, %c0_10] : memref<128x96xf32, #tpu.memory_space<vmem>>, vector<128x96xf32>
    %cst = arith.constant dense<0.000000e+00> : vector<128x512xf32>
    %40 = tpu.matmul %39, %38, %cst {dimension_numbers = #tpu.dot_dimension_numbers<[1], [0], [0], [1], [0, 0, 1, 1], [], []>} : vector<128x96xf32>, vector<96x512xf32>, vector<128x512xf32> -> vector<128x512xf32>
    %c0_11 = arith.constant 0 : index
    %c0_12 = arith.constant 0 : index
    %41 = vector.load %arg5[%c0_11, %c0_12] : memref<128x1xf32, #tpu.memory_space<vmem>>, vector<128x1xf32>
    %42 = vector.broadcast %41 : vector<128x1xf32> to vector<128x512xf32>
    %43 = arith.addf %40, %42 : vector<128x512xf32>
    %44 = vector.extract_strided_slice %43 {offsets = [0, 0], sizes = [64, 512], strides = [1, 1]} : vector<128x512xf32> to vector<64x512xf32>
    %45 = vector.extract_strided_slice %43 {offsets = [64, 0], sizes = [64, 512], strides = [1, 1]} : vector<128x512xf32> to vector<64x512xf32>
    %46 = arith.maximumf %44, %45 : vector<64x512xf32>
    %c510_i32_13 = arith.constant 510 : i32
    %47 = tpu.dynamic_rotate %46 by %c510_i32_13 dim 1 : vector<64x512xf32>, i32 -> vector<64x512xf32>
    %48 = arith.maximumf %46, %47 : vector<64x512xf32>
    %c0_14 = arith.constant 0 : index
    %c0_15 = arith.constant 0 : index
    %49 = vector.load %arg6[%c0_14, %c0_15] : memref<512x8xf32, #tpu.memory_space<vmem>>, vector<512x8xf32>
    %cst_16 = arith.constant dense<0.000000e+00> : vector<64x8xf32>
    %50 = tpu.matmul %48, %49, %cst_16 {dimension_numbers = #tpu.dot_dimension_numbers<[1], [0], [0], [1], [0, 0, 1, 1], [], []>} : vector<64x512xf32>, vector<512x8xf32>, vector<64x8xf32> -> vector<64x8xf32>
    %51 = tpu.transpose %50, [1, 0] : vector<64x8xf32> -> vector<8x64xf32>
    %c0_17 = arith.constant 0 : index
    %c0_18 = arith.constant 0 : index
    %52 = vector.load %arg7[%c0_17, %c0_18] : memref<64x128xf32, #tpu.memory_space<vmem>>, vector<64x128xf32>
    %cst_19 = arith.constant dense<0.000000e+00> : vector<8x128xf32>
    %53 = tpu.matmul %51, %52, %cst_19 {dimension_numbers = #tpu.dot_dimension_numbers<[1], [0], [0], [1], [0, 0, 1, 1], [], []>} : vector<8x64xf32>, vector<64x128xf32>, vector<8x128xf32> -> vector<8x128xf32>
    %c0_20 = arith.constant 0 : index
    %c0_21 = arith.constant 0 : index
    %54 = vector.load %arg8[%c0_20, %c0_21] : memref<1x128xf32, #tpu.memory_space<vmem>>, vector<1x128xf32>
    %55 = vector.broadcast %54 : vector<1x128xf32> to vector<8x128xf32>
    %56 = arith.addf %53, %55 : vector<8x128xf32>
    %c0_22 = arith.constant 0 : index
    %c0_23 = arith.constant 0 : index
    %c0_24 = arith.constant 0 : index
    %57 = vector.load %arg9[%c0_22, %c0_23, %c0_24] : memref<1x8x128xf32, #tpu.memory_space<vmem>>, vector<1x8x128xf32>
    %58 = vector.shape_cast %57 : vector<1x8x128xf32> to vector<8x128xf32>
    %59 = vector.shape_cast %56 : vector<8x128xf32> to vector<1x8x128xf32>
    tpu.vector_store %arg9[%c0_22, %c0_23, %c0_24], %59 {strides = array<i32>} : memref<1x8x128xf32, #tpu.memory_space<vmem>>, vector<1x8x128xf32>,
    return
  }
  func.func @transform_0(%arg0: i32) -> (i32, i32, i32) {
    %c0_i32 = arith.constant 0 : i32
    %c0_i32_0 = arith.constant 0 : i32
    %c0_i32_1 = arith.constant 0 : i32
    return %arg0, %c0_i32, %c0_i32_0 : i32, i32, i32
  }
  func.func @transform_1(%arg0: i32) -> (i32, i32) {
    %c0_i32 = arith.constant 0 : i32
    %c0_i32_0 = arith.constant 0 : i32
    %c0_i32_1 = arith.constant 0 : i32
    return %c0_i32, %c0_i32_0 : i32, i32
  }
  func.func @transform_2(%arg0: i32) -> (i32, i32) {
    %c0_i32 = arith.constant 0 : i32
    %c0_i32_0 = arith.constant 0 : i32
    %c0_i32_1 = arith.constant 0 : i32
    return %c0_i32, %c0_i32_0 : i32, i32
  }
  func.func @transform_3(%arg0: i32) -> (i32, i32) {
    %c0_i32 = arith.constant 0 : i32
    %c0_i32_0 = arith.constant 0 : i32
    %c0_i32_1 = arith.constant 0 : i32
    return %c0_i32, %c0_i32_0 : i32, i32
  }
  func.func @transform_4(%arg0: i32) -> (i32, i32) {
    %c0_i32 = arith.constant 0 : i32
    %c0_i32_0 = arith.constant 0 : i32
    %c0_i32_1 = arith.constant 0 : i32
    return %c0_i32, %c0_i32_0 : i32, i32
  }
  func.func @transform_5(%arg0: i32) -> (i32, i32) {
    %c0_i32 = arith.constant 0 : i32
    %c0_i32_0 = arith.constant 0 : i32
    %c0_i32_1 = arith.constant 0 : i32
    return %c0_i32, %c0_i32_0 : i32, i32
  }
  func.func @transform_6(%arg0: i32) -> (i32, i32) {
    %c0_i32 = arith.constant 0 : i32
    %c0_i32_0 = arith.constant 0 : i32
    %c0_i32_1 = arith.constant 0 : i32
    return %c0_i32, %c0_i32_0 : i32, i32
  }
  func.func @transform_7(%arg0: i32) -> (i32, i32) {
    %c0_i32 = arith.constant 0 : i32
    %c0_i32_0 = arith.constant 0 : i32
    %c0_i32_1 = arith.constant 0 : i32
    return %c0_i32, %c0_i32_0 : i32, i32
  }
  func.func @transform_8(%arg0: i32) -> (i32, i32, i32) {
    %c0_i32 = arith.constant 0 : i32
    %c0_i32_0 = arith.constant 0 : i32
    %c0_i32_1 = arith.constant 0 : i32
    return %arg0, %c0_i32, %c0_i32_0 : i32, i32, i32
  }
}

</mosaic_0001>

<bundles_post_ra>
// kernel: lnet_forward.1
= control target key start
LH: loop header
LB: loop body
LE: loop exit
PB: predicated region body
PF: predicated region fallthrough
CT: control target
= control target key end

     0   :  { %13 = vsyncpa [#allocation3], 0  ;;  %s4110_s0 = inlined_call_operand.vmem [shape: f32[2,1,512], index: 0, kind: input, shape index: {}]   ;;  %s4111_s1 = inlined_call_operand.vmem [shape: f32[3,512], index: 1, kind: input, shape index: {}]   ;;  %s4112_s2 = inlined_call_operand.vmem [shape: f32[64,4], index: 2, kind: input, shape index: {}]   ;;  %s4113_s3 = inlined_call_operand.vmem [shape: f32[128,96], index: 3, kind: input, shape index: {}]   ;;  %s4114_s4 = inlined_call_operand.vmem [shape: f32[128,1], index: 4, kind: input, shape index: {}]   ;;  %s4115_s5 = inlined_call_operand.vmem [shape: f32[512,8], index: 5, kind: input, shape index: {}]   ;;  %s4116_s6 = inlined_call_operand.vmem [shape: f32[64,128], index: 6, kind: input, shape index: {}]   ;;  %s4117_s7 = inlined_call_operand.vmem [shape: f32[1,128], index: 7, kind: input, shape index: {}]   ;;  %s4118_s8 = inlined_call_operand.hbm [shape: f32[2,8,128], index: 8, kind: output, shape index: {}]  }
   0x1   :  { %15 = vsyncpa [#allocation3 + $0x1], 0  ;;  %s2570_s27 = smov 0   ;;  %s2572_s28 = smov 0  }
   0x2   :  { %s2574_s29 = smov 0   ;;  %s2576_s30 = smov 0  }
   0x3 LB: > { %s2591_s9 = sadd.s32 4294967295, %s2512_s30   ;;  %s2117_s10 = sadd.s32 4294967294, %s2512_s30   ;;  %s2512_s30 = sphi %s2576_s30, %s4179_s30   ;;  %s2508_s29 = sphi %s2574_s29, %s4178_s29   ;;  %s2504_s28 = sphi %s2572_s28, %s4177_s28   ;;  %s2500_s27 = sphi %s2570_s27, %s4176_s27  }
   0x4   : > { %s2595_s11 = sadd.s32 1, %s2512_s30   ;;  %s201_s12 = sadd.s32 1, %s2508_s29 }
   0x5   : > { %s198_s13 = ssub.s32 %s2512_s30, %s2595_s11  ;;  %p211_p0 = scmp.ne.s32.totalorder %s2508_s29, %s2504_s28 }
   0x6   : > { %p199_p1 = scmp.eq.s32.totalorder %s198_s13, 0  ;;  %p212_p2 = scmp.eq.s32.totalorder %s2591_s9, 1 }
   0x7   : > { %p217_p3 = scmp.ne.s32.totalorder %s2504_s28, %s2500_s27  ;;  %p218_p4 = scmp.eq.s32.totalorder %s2117_s10, 1 }
   0x8   : > { %s2606_s14 = scalar_select %p199_p1, %s2508_s29, %s201_s12  }
   0x9   : > { %p2608_p5 = por %p212_p2, %p211_p0  ;;  %p2612_p6 = por %p218_p4, %p217_p3 }
   0xa   : > { %p2120_p7 = scmp.ge.s32.totalorder %s2512_s30, 1  ;;  %p264_p8 = scmp.lt.s32.totalorder %s2512_s30, 3 }
   0xc   : > { %p265_p9 = pnand %p2120_p7, %p264_p8 }
   0xe   : > { %268 = sbr.rel (%p265_p9) target bundleno = 1432 (0x598), region = 52 }
  0x13   : > { %v2621_v0 = vld [vmem:[%s4112_s2 + $0x38] sm:$0xff]  ;;  %p297_p10 = scmp.lt.s32.totalorder %s2591_s9, 1  ;;  %v308_v1 = vlaneseq  ;;  %v2514_v2 = vmov 0   ;;  %v2515_v9 = vmov 1   ;;  %s2516_s24 = smov 1   ;;  %v408_v15 = vld [vmem:[%s4112_s2 + $0x10] sm:$0xff] }
  0x14   : > { %2353 = vset.pattern.permute.xlu1 %v2514_v2  ;;  %2352 = vset.pattern.permute.xlu0 %v2514_v2  ;;  %v409_v14 = vld [vmem:[%s4112_s2 + $0x18] sm:$0xff]  ;;  %s2517_s10 = smov 127   ;;  %v407_v16 = vld [vmem:[%s4112_s2 + $0x8] sm:$0xff]  ;;  %v412_v17 = vld [vmem:[%s4112_s2 + $0x30] sm:$0xff]  ;;  %v2518_v19 = vmov 2   ;;  %v2519_v22 = vmov 3  }
  0x15   : > { %451 = vperm.xlu1 %2353, %v2621_v0   ;;  %s298_s19 = scalar_select %p297_p10, %s2591_s9, 1  ;;  %v309_v3 = vshrl.u32 %v308_v1, 7  ;;  %v406_v18 = vld [vmem:[%s4112_s2] sm:$0xff]  ;;  %v411_v20 = vld [vmem:[%s4112_s2 + $0x28] sm:$0xff]  ;;  %v2712_v42 = vand.u32 127, %v308_v1  ;;  %vm1117_vm4 = vcmask 785408  }
  0x16   : > { %v410_v21 = vld [vmem:[%s4112_s2 + $0x20] sm:$0xff]  ;;  %vm2523_vm5 = vmmov 0   ;;  %vm1969_vm6 = vcmask 523264   ;;  %s2160_s13 = sshll.u32 %s2591_s9, 7 }
  0x17   : > { %s2122_s20 = sshll.u32 %s298_s19, 2  ;;  %v2629_v4 = vsub.s32 0, %v309_v3  ;;  %v2631_v5 = vsub.s32 2, %v309_v3  ;;  %v2636_v6 = vsub.s32 3, %v309_v3  ;;  %v2638_v7 = vsub.s32 1, %v309_v3  ;;  %4144 = vst [vmem:[#allocation9_spill] sm:$0xff] %v2712_v42  ;;  %s4075_s21 = scalar_lea.hbm %s4118_s8, %s2160_s13 }
  0x18   : > { %s300_s23 = scalar_lea.vmem %s4110_s0, %s2122_s20  ;;  %v302_v43 = vld [vmem:[%s4111_s1] ss:$4 sm:$0xf]  ;;  %vm338_vm0 = vcmp.lt.s32.totalorder %v2712_v42, 1  ;;  %vm376_vm1 = vcmp.lt.s32.totalorder %v2712_v42, 127  ;;  %s2520_s19 = smov 126  }
  0x19   : > { %4140 = vst [vmem:[#allocation5_spill] sm:$0xff] %v2629_v4  ;;  %4141 = vst [vmem:[#allocation6_spill] sm:$0xff] %v2631_v5  ;;  %v301_v8 = vld [vmem:[%s300_s23] sm:$0xf]  ;;  %2354 = vset.pattern.permute.xlu1 %v2515_v9  ;;  %v2723_v46 = vrot.slane %v302_v43, %v2638_v7  ;;  %v2726_v47 = vrot.slane %v302_v43, %v2631_v5  ;;  %v2729_v48 = vrot.slane %v302_v43, %v2629_v4  ;;  %s2524_s23 = smov [#allocation2]  }
  0x1a   : > { %4142 = vst [vmem:[#allocation7_spill] sm:$0xff] %v2636_v6  ;;  %4143 = vst [vmem:[#allocation8_spill] sm:$0xff] %v2638_v7  ;;  %v2641_v10 = vrot.slane %v301_v8, %v2631_v5  ;;  %v2644_v11 = vrot.slane %v301_v8, %v2629_v4  ;;  %v2649_v12 = vrot.slane %v301_v8, %v2636_v6  ;;  %v2123_v59 = vld [vmem:[%s4111_s1 + $0x1] ss:$4 sm:$0xf]  ;;  %s2456_s9 = sshll.u32 %s2524_s23, 4  ;;  %s2457_s9 = int_to_ptr.vmem [resolvable:$false] %s2456_s9 }
  0x1b   : > { %v2652_v13 = vrot.slane %v301_v8, %v2638_v7  ;;  %4145 = vst [vmem:[#allocation10_spill] sm:$0xff] %v2723_v46  ;;  %4146 = vst [vmem:[#allocation11_spill] sm:$0xff] %v2726_v47  ;;  %v2732_v49 = vrot.slane %v302_v43, %v2636_v6  ;;  %v385_v61 = vrot.slane %v2123_v59, %v2629_v4 }
  0x1c   : > { %332 = vrot.lane.b32.xlu1 %v2641_v10, %s2516_s24  ;;  %328 = vrot.lane.b32.xlu0 %v2644_v11, %s2516_s24  ;;  %4147 = vst [vmem:[#allocation12_spill] sm:$0xff] %v2729_v48  ;;  %v389_v62 = vrot.slane %v2123_v59, %v2638_v7  ;;  %v393_v63 = vrot.slane %v2123_v59, %v2631_v5 }
  0x1d   : > { %4148 = vst [vmem:[#allocation13_spill] sm:$0xff] %v2732_v49 }
  0x20   : > { %334 = vrot.lane.b32.xlu1 %v2649_v12, %s2516_s24  ;;  %330 = vrot.lane.b32.xlu0 %v2652_v13, %s2516_s24  ;;  %s294_s24 = sand.u32 1, %s2504_s28  }
  0x21   : > { %s2121_s25 = sshll.u32 %s294_s24, 3 }
  0x22   : > { %s296_s17 = scalar_lea.vmem [#allocation2], %s2121_s25  ;;  %s2458_s25 = scalar_lea.vmem %s2457_s9, 256 }
  0x23   : > { %s2058_s18 = sshll.u32 %s296_s17, 4  ;;  %s2059_s18 = int_to_ptr.vmem [resolvable:$true] %s2058_s18 }
  0x24   : > { %515 = vperm.xlu1 %2354, %v409_v14   ;;  %431 = vperm.xlu0 %2352, %v409_v14   ;;  %s2452_s22 = scalar_lea.vmem %s2059_s18, 128  ;;  %p2459_p0 = scmp.lt.s32.totalorder %s2059_s18, %s2457_s9 }
  0x25   : > { %p2453_p11 = scmp.ne.s32.totalorder %s2059_s18, %s2452_s22  ;;  %p2460_p1 = scmp.lt.s32.totalorder %s2458_s25, %s2452_s22 }
  0x27   : > { %p2454_p12 = pnand %p2453_p11, %p2608_p5  ;;  %p2461_p2 = por %p2460_p1, %p2459_p0 }
  0x28   : > { %368 = vrot.lane.b32.xlu1 %v2644_v11, %s2517_s10  ;;  %372 = vrot.lane.b32.xlu0 %v2641_v10, %s2517_s10 }
  0x29   : > { %2355 = vset.pattern.permute.xlu1 %v2514_v2  ;;  %p2455_p13 = pneg %p2454_p12 }
  0x2b   : > { %p2462_p3 = pnand %p2461_p2, %p2455_p13 }
  0x2c   : > { %370 = vrot.lane.b32.xlu1 %v2652_v13, %s2517_s10  ;;  %426 = vperm.xlu0 %2352, %v408_v15  }
  0x30   : > { %374 = vrot.lane.b32.xlu1 %v2649_v12, %s2517_s10  ;;  %421 = vperm.xlu0 %2352, %v407_v16  }
  0x34   : > { %446 = vperm.xlu1 %2355, %v412_v17   ;;  %416 = vperm.xlu0 %2352, %v406_v18  }
  0x38   : > { %2356 = vset.pattern.permute.xlu1 %v2515_v9  ;;  %2361 = vset.pattern.permute.xlu0 %v2515_v9 }
  0x39   : > { %511 = vperm.xlu1 %2356, %v408_v15   ;;  %531 = vperm.xlu0 %2361, %v2621_v0  }
  0x3d   : > { %2357 = vset.pattern.permute.xlu1 %v2518_v19  ;;  %527 = vperm.xlu0 %2361, %v412_v17  }
  0x3e   : > { %611 = vperm.xlu1 %2357, %v409_v14  }
  0x41   : > { %523 = vperm.xlu0 %2361, %v411_v20  }
  0x42   : > { %627 = vperm.xlu1 %2357, %v2621_v0  }
  0x45   : > { %519 = vperm.xlu0 %2361, %v410_v21  }
  0x46   : > { %2358 = vset.pattern.permute.xlu1 %v2514_v2 }
  0x47   : > { %441 = vperm.xlu1 %2358, %v411_v20  }
  0x49   : > { %2367 = vset.pattern.permute.xlu0 %v2518_v19 }
  0x4a   : > { %615 = vperm.xlu0 %2367, %v410_v21  }
  0x4b   : > { %2359 = vset.pattern.permute.xlu1 %v2515_v9 }
  0x4c   : > { %507 = vperm.xlu1 %2359, %v407_v16  }
  0x4e   : > { %2368 = vset.pattern.permute.xlu0 %v2519_v22 }
  0x4f   : > { %723 = vperm.xlu0 %2368, %v409_v14  }
  0x50   : > { %2360 = vset.pattern.permute.xlu1 %v2518_v19 }
  0x51   : > { %607 = vperm.xlu1 %2360, %v408_v15  }
  0x53   : > { %715 = vperm.xlu0 %2368, %v407_v16  }
  0x55   : > { %623 = vperm.xlu1 %2360, %v412_v17  }
  0x57   : > { %727 = vperm.xlu0 %2368, %v410_v21  }
  0x59   : > { %2362 = vset.pattern.permute.xlu1 %v2514_v2 }
  0x5a   : > { %436 = vperm.xlu1 %2362, %v410_v21  }
  0x5b   : > { %2371 = vset.pattern.permute.xlu0 %v2514_v2 }
  0x5e   : > { %2363 = vset.pattern.permute.xlu1 %v2515_v9 }
  0x5f   : > { %503 = vperm.xlu1 %2363, %v406_v18  }
  0x63   : > { %2364 = vset.pattern.permute.xlu1 %v2518_v19 }
  0x64   : > { %603 = vperm.xlu1 %2364, %v407_v16  }
  0x68   : > { %619 = vperm.xlu1 %2364, %v411_v20  }
  0x6c   : > { %2365 = vset.pattern.permute.xlu1 %v2519_v22 }
  0x6d   : > { %739 = vperm.xlu1 %2365, %v2621_v0   ;;  %v397_v0 = vrot.slane %v2123_v59, %v2636_v6 }
  0x71   : > { %2366 = vset.pattern.permute.xlu1 %v2518_v19 }
  0x72   : > { %599 = vperm.xlu1 %2366, %v406_v18  }
  0x76   : > { %2369 = vset.pattern.permute.xlu1 %v2519_v22 }
  0x77   : > { %719 = vperm.xlu1 %2369, %v408_v15  }
  0x7b   : > { %735 = vperm.xlu1 %2369, %v412_v17  }
  0x7f   : > { %731 = vperm.xlu1 %2369, %v411_v20  }
  0x83   : > { %711 = vperm.xlu1 %2369, %v406_v18  }
  0x87   : > { %2370 = vset.pattern.permute.xlu1 %v2514_v2 }
  0x8e   : > { %v329_v27 = vpop.permute.xlu0 %328 }
  0x90   : > { %v2693_v23 = vpop.permute.xlu1 %451 }
  0x92   : > { %v331_v29 = vpop.permute.xlu0 %330 }
  0x93   : > { %v341_v50 = vsel %vm338_vm0, %v329_v27, %v331_v29 }
  0x94   : > { %v333_v24 = vpop.permute.xlu1 %332  ;;  %v365_v55 = vmul.f32 %v2723_v46, %v341_v50 }
  0x95   : > { %v340_v51 = vsel %vm338_vm0, %v331_v29, %v333_v24 }
  0x96   : > { %v366_v56 = vmul.f32 %v2726_v47, %v340_v51  ;;  %v2753_v2 = vrot.slane %v365_v55, %v2629_v4 }
  0x98   : > { %v335_v25 = vpop.permute.xlu1 %334  ;;  %v2756_v3 = vrot.slane %v366_v56, %v2629_v4  ;;  %v499_v51 = vmul.f32 %v2753_v2, %v2693_v23 }
  0x99   : > { %v339_v52 = vsel %vm338_vm0, %v333_v24, %v335_v25  ;;  %v342_v53 = vsel %vm338_vm0, %v335_v25, %v329_v27 }
  0x9a   : > { %v364_v57 = vmul.f32 %v2729_v48, %v342_v53  ;;  %v367_v58 = vmul.f32 %v2732_v49, %v339_v52 }
  0x9c   : > { %v2759_v8 = vrot.slane %v364_v57, %v2629_v4  ;;  %v2762_v9 = vrot.slane %v367_v58, %v2629_v4 }
  0x9f   : > { %v516_v26 = vpop.permute.xlu1 %515  ;;  %v432_v31 = vpop.permute.xlu0 %431 }
  0xa0   : > { %v546_v14 = vmul.f32 %v516_v26, %v2644_v11  ;;  %v547_v15 = vmul.f32 %v516_v26, %v2652_v13  ;;  %v548_v16 = vmul.f32 %v516_v26, %v2641_v10  ;;  %v549_v17 = vmul.f32 %v516_v26, %v2649_v12 }
  0xa1   : > { %v482_v18 = vmul.f32 %v2759_v8, %v432_v31  ;;  %v483_v19 = vmul.f32 %v2753_v2, %v432_v31  ;;  %v484_v22 = vmul.f32 %v2756_v3, %v432_v31  ;;  %v485_v24 = vmul.f32 %v2762_v9, %v432_v31 }
  0xa3   : > { %v369_v28 = vpop.permute.xlu1 %368  ;;  %v373_v34 = vpop.permute.xlu0 %372  ;;  %v580_v53 = vadd.f32 %v548_v16, %v484_v22  ;;  %v581_v55 = vadd.f32 %v549_v17, %v485_v24  ;;  %v578_v56 = vadd.f32 %v546_v14, %v482_v18 }
  0xa7   : > { %v371_v30 = vpop.permute.xlu1 %370  ;;  %v2699_v36 = vpop.permute.xlu0 %426 }
  0xa8   : > { %v378_v20 = vsel %vm376_vm1, %v371_v30, %v373_v34  ;;  %v379_v21 = vsel %vm376_vm1, %v369_v28, %v371_v30  ;;  %v500_v30 = vmul.f32 %v2756_v3, %v2693_v23  ;;  %v478_v57 = vmul.f32 %v2759_v8, %v2699_v36 }
  0xa9   : > { %v402_v43 = vmul.f32 %v385_v61, %v379_v21  ;;  %v403_v50 = vmul.f32 %v389_v62, %v378_v20  ;;  %v479_v58 = vmul.f32 %v2753_v2, %v2699_v36  ;;  %v480_v59 = vmul.f32 %v2756_v3, %v2699_v36 }
  0xaa   : > { %v481_v61 = vmul.f32 %v2762_v9, %v2699_v36 }
  0xab   : > { %v375_v32 = vpop.permute.xlu1 %374  ;;  %v2703_v38 = vpop.permute.xlu0 %421  ;;  %v2801_v62 = vrot.slane %v402_v43, %v2629_v4 }
  0xac   : > { %v377_v25 = vsel %vm376_vm1, %v373_v34, %v375_v32  ;;  %v380_v26 = vsel %vm376_vm1, %v375_v32, %v369_v28  ;;  %v498_v34 = vmul.f32 %v2759_v8, %v2693_v23  ;;  %v501_v28 = vmul.f32 %v2762_v9, %v2693_v23 }
  0xad   : > { %v404_v52 = vmul.f32 %v393_v63, %v377_v25  ;;  %v405_v31 = vmul.f32 %v397_v0, %v380_v26  ;;  %v579_v32 = vadd.f32 %v547_v15, %v483_v19  ;;  %v2804_v23 = vrot.slane %v403_v50, %v2629_v4 }
  0xae   : > { %v2808_v63 = vmul.f32 %v2759_v8, %v2703_v38  ;;  %v2812_v0 = vmul.f32 %v2753_v2, %v2703_v38  ;;  %v2826_v17 = vmul.f32 %v2756_v3, %v2703_v38  ;;  %v2830_v18 = vmul.f32 %v2762_v9, %v2703_v38 }
  0xaf   : > { %v2695_v33 = vpop.permute.xlu1 %446  ;;  %v2707_v40 = vpop.permute.xlu0 %416  ;;  %v2819_v36 = vrot.slane %v404_v52, %v2629_v4  ;;  %v2822_v16 = vrot.slane %v405_v31, %v2629_v4 }
  0xb0   : > { %v494_v24 = vmul.f32 %v2759_v8, %v2695_v33  ;;  %v495_v25 = vmul.f32 %v2753_v2, %v2695_v33  ;;  %v496_v38 = vmul.f32 %v2756_v3, %v2695_v33  ;;  %v497_v26 = vmul.f32 %v2762_v9, %v2695_v33 }
  0xb1   : > { %v2850_v43 = vmul.f32 %v2759_v8, %v2707_v40  ;;  %v2854_v50 = vmul.f32 %v2753_v2, %v2707_v40  ;;  %v2862_v52 = vmul.f32 %v2762_v9, %v2707_v40 }
  0xb3   : > { %4151 = vst [vmem:[#allocation16_spill] sm:$0xff] %v2850_v43  ;;  %4152 = vst [vmem:[#allocation17_spill] sm:$0xff] %v2854_v50 }
  0xb4   : > { %v2697_v35 = vpop.permute.xlu1 %511  ;;  %v2720_v45 = vpop.permute.xlu0 %531  ;;  %4154 = vst [vmem:[#allocation19_spill] sm:$0xff] %v2862_v52 }
  0xb5   : > { %v542_v19 = vmul.f32 %v2697_v35, %v2644_v11  ;;  %v543_v20 = vmul.f32 %v2697_v35, %v2652_v13  ;;  %v544_v21 = vmul.f32 %v2697_v35, %v2641_v10  ;;  %v545_v22 = vmul.f32 %v2697_v35, %v2649_v12 }
  0xb6   : > { %v2858_v35 = vmul.f32 %v2756_v3, %v2707_v40  ;;  %v562_v31 = vmul.f32 %v2720_v45, %v2644_v11  ;;  %v563_v33 = vmul.f32 %v2720_v45, %v2652_v13  ;;  %v564_v47 = vmul.f32 %v2720_v45, %v2641_v10 }
  0xb7   : > { %v565_v49 = vmul.f32 %v2720_v45, %v2649_v12  ;;  %v2876_v5 = vadd.f32 %v542_v19, %v478_v57  ;;  %v2878_v40 = vadd.f32 %v543_v20, %v479_v58  ;;  %v2880_v6 = vadd.f32 %v544_v21, %v480_v59 }
  0xb8   : > { %v2743_v60 = vpop.permute.xlu0 %527  ;;  %4153 = vst [vmem:[#allocation18_spill] sm:$0xff] %v2858_v35  ;;  %v2882_v4 = vadd.f32 %v545_v22, %v481_v61  ;;  %v594_v19 = vadd.f32 %v562_v31, %v498_v34  ;;  %v595_v20 = vadd.f32 %v563_v33, %v499_v51  ;;  %v596_v52 = vadd.f32 %v564_v47, %v500_v30 }
  0xb9   : > { %v2701_v37 = vpop.permute.xlu1 %611  ;;  %v558_v7 = vmul.f32 %v2743_v60, %v2644_v11  ;;  %v559_v42 = vmul.f32 %v2743_v60, %v2652_v13  ;;  %v560_v45 = vmul.f32 %v2743_v60, %v2641_v10  ;;  %v561_v35 = vmul.f32 %v2743_v60, %v2649_v12 }
  0xba   : > { %v658_v57 = vmul.f32 %v2801_v62, %v2701_v37  ;;  %v659_v58 = vmul.f32 %v2804_v23, %v2701_v37  ;;  %v660_v59 = vmul.f32 %v2819_v36, %v2701_v37  ;;  %v661_v61 = vmul.f32 %v2822_v16, %v2701_v37 }
  0xbb   : > { %v597_v43 = vadd.f32 %v565_v49, %v501_v28  ;;  %v2912_v37 = vadd.f32 %v559_v42, %v495_v25  ;;  %v2914_v51 = vadd.f32 %v560_v45, %v496_v38  ;;  %v2916_v34 = vadd.f32 %v561_v35, %v497_v26 }
  0xbc   : > { %v2780_v27 = vpop.permute.xlu0 %523  ;;  %v691_v31 = vadd.f32 %v659_v58, %v579_v32  ;;  %v692_v33 = vadd.f32 %v660_v59, %v580_v53  ;;  %v690_v47 = vadd.f32 %v658_v57, %v578_v56 }
  0xbd   : > { %v2705_v39 = vpop.permute.xlu1 %627  ;;  %v554_v49 = vmul.f32 %v2780_v27, %v2644_v11  ;;  %v555_v30 = vmul.f32 %v2780_v27, %v2652_v13  ;;  %v556_v42 = vmul.f32 %v2780_v27, %v2641_v10  ;;  %v557_v26 = vmul.f32 %v2780_v27, %v2649_v12 }
  0xbe   : > { %v674_v21 = vmul.f32 %v2801_v62, %v2705_v39  ;;  %v675_v60 = vmul.f32 %v2804_v23, %v2705_v39  ;;  %v676_v50 = vmul.f32 %v2819_v36, %v2705_v39 }
  0xc0   : > { %v2814_v14 = vpop.permute.xlu0 %519  ;;  %v708_v32 = vadd.f32 %v676_v50, %v596_v52 }
  0xc1   : > { %v2930_v35 = vmul.f32 %v2814_v14, %v2644_v11  ;;  %v551_v52 = vmul.f32 %v2814_v14, %v2652_v13  ;;  %v2944_v27 = vmul.f32 %v2814_v14, %v2641_v10  ;;  %v2948_v59 = vmul.f32 %v2814_v14, %v2649_v12 }
  0xc2   : > { %v2709_v41 = vpop.permute.xlu1 %441 }
  0xc3   : > { %v490_v28 = vmul.f32 %v2759_v8, %v2709_v41  ;;  %v491_v45 = vmul.f32 %v2753_v2, %v2709_v41  ;;  %v492_v57 = vmul.f32 %v2756_v3, %v2709_v41 }
  0xc5   : > { %v2874_v46 = vpop.permute.xlu0 %615 }
  0xc7   : > { %v2718_v44 = vpop.permute.xlu1 %507 }
  0xc8   : > { %v539_v14 = vmul.f32 %v2718_v44, %v2652_v13 }
  0xcc   : > { %v2734_v54 = vpop.permute.xlu1 %607 }
  0xd0   : > { %v2750_v1 = vpop.permute.xlu1 %623 }
  0xd5   : > { %v2782_v29 = vpop.permute.xlu1 %436 }
  0xd6   : > { %4149 = vst [vmem:[#allocation14_spill] sm:$0xff] %v2782_v29  ;;  %v693_v29 = vadd.f32 %v661_v61, %v581_v55  ;;  %v493_v61 = vmul.f32 %v2762_v9, %v2709_v41  ;;  %v2964_v41 = vadd.f32 %v556_v42, %v492_v57  ;;  %v657_v42 = vmul.f32 %v2822_v16, %v2734_v54 }
  0xda   : > { %v2816_v15 = vpop.permute.xlu1 %503 }
  0xdb   : > { %4150 = vst [vmem:[#allocation15_spill] sm:$0xff] %v2816_v15  ;;  %v677_v15 = vmul.f32 %v2822_v16, %v2705_v39  ;;  %v706_v39 = vadd.f32 %v674_v21, %v594_v19 }
  0xdd   : > { %v709_v53 = vadd.f32 %v677_v15, %v597_v43 }
  0xdf   : > { %v2872_v48 = vpop.permute.xlu1 %603 }
  0xe0   : > { %4155 = vst [vmem:[#allocation20_spill] sm:$0xff] %v2872_v48  ;;  %v2910_v48 = vadd.f32 %v558_v7, %v494_v24  ;;  %v707_v7 = vadd.f32 %v675_v60, %v595_v20  ;;  %v2958_v60 = vadd.f32 %v554_v49, %v490_v28  ;;  %v654_v49 = vmul.f32 %v2801_v62, %v2734_v54 }
  0xe1   : > { %v670_v28 = vmul.f32 %v2801_v62, %v2750_v1 }
  0xe3   : > { %v2904_v22 = vpop.permute.xlu1 %619 }
  0xe4   : > { %4156 = vst [vmem:[#allocation21_spill] sm:$0xff] %v2904_v22  ;;  %v724_v22 = vpop.permute.xlu0 %723 }
  0xe5   : > { %v754_v55 = vadd.f32 %v724_v22, %v690_v47  ;;  %v755_v25 = vadd.f32 %v724_v22, %v691_v31  ;;  %v756_v19 = vadd.f32 %v724_v22, %v692_v33  ;;  %v757_v20 = vadd.f32 %v724_v22, %v693_v29 }
  0xe6   : > { %v538_v31 = vmul.f32 %v2718_v44, %v2644_v11  ;;  %v587_v47 = vadd.f32 %v555_v30, %v491_v45  ;;  %v540_v29 = vmul.f32 %v2718_v44, %v2641_v10  ;;  %v541_v22 = vmul.f32 %v2718_v44, %v2649_v12 }
  0xe7   : > { %v656_v30 = vmul.f32 %v2819_v36, %v2734_v54  ;;  %v671_v44 = vmul.f32 %v2804_v23, %v2750_v1 }
  0xe8   : > { %v740_v24 = vpop.permute.xlu1 %739  ;;  %v572_v45 = vadd.f32 %v540_v29, %v2826_v17  ;;  %v573_v57 = vadd.f32 %v541_v22, %v2830_v18  ;;  %v4159_v18 = vld [vmem:[#allocation20_spill] sm:$0xff] }
  0xe9   : > { %v770_v56 = vadd.f32 %v740_v24, %v706_v39  ;;  %v771_v38 = vadd.f32 %v740_v24, %v707_v7  ;;  %v772_v58 = vadd.f32 %v740_v24, %v708_v32  ;;  %v773_v50 = vadd.f32 %v740_v24, %v709_v53 }
  0xea   : > { %v655_v7 = vmul.f32 %v2804_v23, %v2734_v54  ;;  %v672_v24 = vmul.f32 %v2819_v36, %v2750_v1  ;;  %v2994_v32 = vmul.f32 %v2801_v62, %v2874_v46  ;;  %v2998_v54 = vmul.f32 %v2804_v23, %v2874_v46 }
  0xeb   : > { %v2936_v15 = vmax.f32 %v755_v25, %v771_v38  ;;  %v2938_v43 = vmax.f32 %v754_v55, %v770_v56  ;;  %v2970_v33 = vmax.f32 %v757_v20, %v773_v50  ;;  %v2972_v39 = vmax.f32 %v756_v19, %v772_v58 }
  0xec   : > { %v673_v53 = vmul.f32 %v2822_v16, %v2750_v1  ;;  %v589_v25 = vadd.f32 %v557_v26, %v493_v61  ;;  %v570_v56 = vadd.f32 %v538_v31, %v2808_v63  ;;  %v571_v38 = vadd.f32 %v539_v14, %v2812_v0 }
  0xed   : > { %v2952_v21 = vpop.permute.xlu1 %599  ;;  %804 = vrot.lane.b32.xlu0 %v2936_v15, %s2517_s10  ;;  %796 = vrot.lane.b32.xlu1 %v2938_v43, %s2517_s10  ;;  %4157 = vst [vmem:[#allocation22_spill] sm:$0xff] %v2970_v33  ;;  %v686_v58 = vadd.f32 %v654_v49, %v2876_v5  ;;  %v687_v50 = vadd.f32 %v655_v7, %v2878_v40  ;;  %v4160_v40 = vld [vmem:[#allocation21_spill] sm:$0xff] }
  0xee   : > { %v688_v19 = vadd.f32 %v656_v30, %v2880_v6  ;;  %v689_v20 = vadd.f32 %v657_v42, %v2882_v4  ;;  %v702_v26 = vadd.f32 %v670_v28, %v2910_v48  ;;  %v703_v63 = vadd.f32 %v671_v44, %v2912_v37 }
  0xef   : > { %v704_v0 = vadd.f32 %v672_v24, %v2914_v51  ;;  %v651_v5 = vmul.f32 %v2804_v23, %v4159_v18  ;;  %v667_v6 = vmul.f32 %v2804_v23, %v4160_v40  ;;  %v705_v4 = vadd.f32 %v673_v53, %v2916_v34 }
  0xf0   : > { %v666_v29 = vmul.f32 %v2801_v62, %v4160_v40  ;;  %v669_v44 = vmul.f32 %v2822_v16, %v4160_v40 }
  0xf1   : > { %820 = vrot.lane.b32.xlu0 %v2970_v33, %s2517_s10  ;;  %812 = vrot.lane.b32.xlu1 %v2972_v39, %s2517_s10  ;;  %v4158_v33 = vld [vmem:[#allocation14_spill] sm:$0xff]  ;;  %v683_v28 = vadd.f32 %v651_v5, %v571_v38  ;;  %v4161_v38 = vld [vmem:[#allocation15_spill] sm:$0xff]  ;;  %v646_v5 = vmul.f32 %v2801_v62, %v2952_v21 }
  0xf2   : > { %v720_v55 = vpop.permute.xlu1 %719  ;;  %v486_v1 = vmul.f32 %v2759_v8, %v4158_v33  ;;  %v487_v17 = vmul.f32 %v2753_v2, %v4158_v33  ;;  %v488_v37 = vmul.f32 %v2756_v3, %v4158_v33  ;;  %v489_v51 = vmul.f32 %v2762_v9, %v4158_v33 }
  0xf3   : > { %v750_v31 = vadd.f32 %v720_v55, %v686_v58  ;;  %v751_v8 = vadd.f32 %v720_v55, %v687_v50  ;;  %v650_v2 = vmul.f32 %v2801_v62, %v4159_v18  ;;  %v652_v3 = vmul.f32 %v2819_v36, %v4159_v18  ;;  %v4163_v62 = vld [vmem:[#allocation16_spill] sm:$0xff] }
  0xf4   : > { %v582_v22 = vadd.f32 %v2930_v35, %v486_v1  ;;  %v583_v30 = vadd.f32 %v551_v52, %v487_v17  ;;  %v653_v9 = vmul.f32 %v2822_v16, %v4159_v18  ;;  %v753_v24 = vadd.f32 %v720_v55, %v689_v20 }
  0xf5   : > { %v699_v35 = vadd.f32 %v667_v6, %v587_v47  ;;  %v682_v53 = vadd.f32 %v650_v2, %v570_v56  ;;  %v668_v52 = vmul.f32 %v2819_v36, %v4160_v40  ;;  %v752_v58 = vadd.f32 %v720_v55, %v688_v19 }
  0xf6   : > { %v736_v61 = vpop.permute.xlu1 %735  ;;  %v698_v50 = vadd.f32 %v666_v29, %v2958_v60  ;;  %v535_v1 = vmul.f32 %v4161_v38, %v2652_v13  ;;  %v534_v56 = vmul.f32 %v4161_v38, %v2644_v11  ;;  %v685_v60 = vadd.f32 %v653_v9, %v573_v57 }
  0xf7   : > { %v766_v14 = vadd.f32 %v736_v61, %v702_v26  ;;  %v767_v48 = vadd.f32 %v736_v61, %v703_v63  ;;  %v769_v49 = vadd.f32 %v736_v61, %v705_v4  ;;  %v768_v33 = vadd.f32 %v736_v61, %v704_v0  ;;  %v716_v63 = vpop.permute.xlu0 %715 }
  0xf8   : > { %v584_v26 = vadd.f32 %v2944_v27, %v488_v37  ;;  %v585_v0 = vadd.f32 %v2948_v59, %v489_v51  ;;  %v647_v17 = vmul.f32 %v2804_v23, %v2952_v21  ;;  %v701_v18 = vadd.f32 %v669_v44, %v589_v25  ;;  %v4162_v23 = vld [vmem:[#allocation17_spill] sm:$0xff] }
  0xf9   : > { %v3031_v34 = vmax.f32 %v751_v8, %v767_v48  ;;  %v3033_v7 = vmax.f32 %v750_v31, %v766_v14  ;;  %v3051_v47 = vmax.f32 %v753_v24, %v769_v49  ;;  %v3056_v19 = vmax.f32 %v752_v58, %v768_v33  ;;  %v4164_v49 = vld [vmem:[#allocation19_spill] sm:$0xff] }
  0xfa   : > { %v732_v42 = vpop.permute.xlu1 %731  ;;  %v747_v13 = vadd.f32 %v716_v63, %v683_v28  ;;  %v684_v27 = vadd.f32 %v652_v3, %v572_v45  ;;  %v700_v11 = vadd.f32 %v668_v52, %v2964_v41  ;;  %v746_v59 = vadd.f32 %v716_v63, %v682_v53 }
  0xfb   : > { %802 = vrot.lane.b32.xlu0 %v3031_v34, %s2517_s10  ;;  %794 = vrot.lane.b32.xlu1 %v3033_v7, %s2517_s10  ;;  %v763_v20 = vadd.f32 %v732_v42, %v699_v35  ;;  %v762_v55 = vadd.f32 %v732_v42, %v698_v50  ;;  %v537_v57 = vmul.f32 %v4161_v38, %v2649_v12  ;;  %v728_v51 = vpop.permute.xlu0 %727 }
  0xfc   : > { %v765_v40 = vadd.f32 %v732_v42, %v701_v18  ;;  %v567_v25 = vadd.f32 %v535_v1, %v4162_v23  ;;  %v536_v45 = vmul.f32 %v4161_v38, %v2641_v10  ;;  %v764_v61 = vadd.f32 %v732_v42, %v700_v11  ;;  %v4167_v11 = vld [vmem:[#allocation22_spill] sm:$0xff] }
  0xfd   : > { %v3070_v6 = vmax.f32 %v747_v13, %v763_v20  ;;  %v566_v31 = vadd.f32 %v534_v56, %v4163_v62  ;;  %v3075_v41 = vmax.f32 %v746_v59, %v762_v55  ;;  %v695_v8 = vadd.f32 %v2998_v54, %v583_v30  ;;  %v4166_v56 = vld [vmem:[#allocation9_spill] sm:$0xff] }
  0xfe   : > { %v712_v4 = vpop.permute.xlu1 %711  ;;  %v649_v14 = vmul.f32 %v2822_v16, %v2952_v21  ;;  %v679_v12 = vadd.f32 %v647_v17, %v567_v25  ;;  %v749_v48 = vadd.f32 %v716_v63, %v685_v60  ;;  %v694_v37 = vadd.f32 %v2994_v32, %v582_v22  ;;  %v4165_v22 = vld [vmem:[#allocation18_spill] sm:$0xff] }
  0xff   : > { %818 = vrot.lane.b32.xlu0 %v3051_v47, %s2517_s10  ;;  %810 = vrot.lane.b32.xlu1 %v3056_v19, %s2517_s10  ;;  %v648_v10 = vmul.f32 %v2819_v36, %v2952_v21  ;;  %v678_v2 = vadd.f32 %v646_v5, %v566_v31  ;;  %v748_v29 = vadd.f32 %v716_v63, %v684_v27  ;;  %vm951_vm2 = vcmp.lt.s32.totalorder %v4166_v56, 126 }
 0x100   : > { %v665_v54 = vmul.f32 %v2822_v16, %v2874_v46  ;;  %v569_v30 = vadd.f32 %v537_v57, %v4164_v49  ;;  %v743_v3 = vadd.f32 %v712_v4, %v679_v12  ;;  %v3090_v9 = vmax.f32 %v749_v48, %v765_v40 }
 0x101   : > { %v664_v32 = vmul.f32 %v2819_v36, %v2874_v46  ;;  %v568_v33 = vadd.f32 %v536_v45, %v4165_v22  ;;  %v742_v42 = vadd.f32 %v712_v4, %v678_v2  ;;  %v3095_v21 = vmax.f32 %v748_v29, %v764_v61 }
 0x102   : > { %v697_v28 = vadd.f32 %v665_v54, %v585_v0  ;;  %v759_v44 = vadd.f32 %v728_v51, %v695_v8  ;;  %v681_v24 = vadd.f32 %v649_v14, %v569_v30  ;;  %v758_v35 = vadd.f32 %v728_v51, %v694_v37 }
 0x103   : > { %800 = vrot.lane.b32.xlu0 %v3070_v6, %s2517_s10  ;;  %792 = vrot.lane.b32.xlu1 %v3075_v41, %s2517_s10  ;;  %v696_v16 = vadd.f32 %v664_v32, %v584_v26  ;;  %v680_v53 = vadd.f32 %v648_v10, %v568_v33  ;;  %vm886_vm3 = vcmp.lt.s32.totalorder %v4166_v56, 2  ;;  %v1960_v56 = vld [vmem:[%s4116_s6 + $0x30] sm:$0xff] }
 0x104   : > { %v745_v52 = vadd.f32 %v712_v4, %v681_v24  ;;  %v3101_v58 = vmax.f32 %v743_v3, %v759_v44  ;;  %v774_v36 = vmax.f32 %v742_v42, %v758_v35  ;;  %v761_v50 = vadd.f32 %v728_v51, %v697_v28  ;;  %v2124_v44 = vld [vmem:[%s4111_s1 + $0x2] ss:$4 sm:$0xf] }
 0x105   : > { %v744_v46 = vadd.f32 %v712_v4, %v680_v53  ;;  %v760_v38 = vadd.f32 %v728_v51, %v696_v16  ;;  %v2522_v28 = vmov 0.0   ;;  %v4168_v16 = vld [vmem:[#allocation8_spill] sm:$0xff]  ;;  %v4169_v53 = vld [vmem:[#allocation5_spill] sm:$0xff] }
 0x106   : > { %v3106_v1 = vmax.f32 %v745_v52, %v761_v50  ;;  %1230 = vmatprep.mubr.f32.mxu0 %v2522_v28  ;;  %1391 = vmatprep.mubr.f32.mxu1 %v2522_v28  ;;  %v3244_v35 = vrot.slane %v2124_v44, %v4168_v16  ;;  %v3247_v52 = vrot.slane %v2124_v44, %v4169_v53 }
 0x107   : > { %816 = vrot.lane.b32.xlu0 %v3090_v9, %s2517_s10  ;;  %808 = vrot.lane.b32.xlu1 %v3095_v21, %s2517_s10  ;;  %v776_v26 = vmax.f32 %v744_v46, %v760_v38 }
 0x10b   : > { %798 = vrot.lane.b32.xlu0 %v3101_v58, %s2517_s10  ;;  %790 = vrot.lane.b32.xlu1 %v774_v36, %s2517_s10 }
 0x10f   : > { %814 = vrot.lane.b32.xlu0 %v3106_v1, %s2517_s10  ;;  %806 = vrot.lane.b32.xlu1 %v776_v26, %s2517_s10  ;;  %s2521_s10 = smov 2  }
 0x15f   : > { %v805_v20 = vpop.permute.xlu0 %804  ;;  %v797_v63 = vpop.permute.xlu1 %796 }
 0x160   : > { %v833_v0 = vsel %vm376_vm1, %v797_v63, %v805_v20 }
 0x161   : > { %v3114_v55 = vmax.f32 %v2938_v43, %v833_v0 }
 0x163   : > { %v821_v60 = vpop.permute.xlu0 %820  ;;  %925 = vrot.lane.b32.xlu1 %v3114_v55, %s2520_s19  ;;  %v813_v17 = vpop.permute.xlu1 %812 }
 0x164   : > { %v825_v18 = vsel %vm376_vm1, %v813_v17, %v821_v60  ;;  %v829_v13 = vsel %vm376_vm1, %v805_v20, %v813_v17  ;;  %v837_v43 = vsel %vm376_vm1, %v821_v60, %v797_v63  ;;  %v4171_v63 = vld [vmem:[#allocation6_spill] sm:$0xff] }
 0x165   : > { %v3123_v27 = vmax.f32 %v2936_v15, %v829_v13  ;;  %v3126_v5 = vmax.f32 %v2972_v39, %v825_v18  ;;  %v3135_v59 = vmax.f32 %v4167_v11, %v837_v43  ;;  %v3259_v0 = vrot.slane %v2124_v44, %v4171_v63  ;;  %v1021_v13 = vld [vmem:[%s4114_s4] sm:$0xff] }
 0x166   : > { %v1029_v43 = vld [vmem:[%s4114_s4 + $0x40] sm:$0xff] }
 0x167   : > { %933 = vrot.lane.b32.xlu0 %v3123_v27, %s2520_s19  ;;  %941 = vrot.lane.b32.xlu1 %v3126_v5, %s2520_s19 }
 0x16b   : > { %949 = vrot.lane.b32.xlu0 %v3135_v59, %s2520_s19 }
 0x16d   : > { %v803_v15 = vpop.permute.xlu0 %802  ;;  %v795_v57 = vpop.permute.xlu1 %794 }
 0x16e   : > { %v832_v39 = vsel %vm376_vm1, %v795_v57, %v803_v15 }
 0x16f   : > { %v3142_v40 = vmax.f32 %v3033_v7, %v832_v39  ;;  %v1023_v39 = vld [vmem:[%s4114_s4 + $0x10] sm:$0xff] }
 0x171   : > { %v819_v23 = vpop.permute.xlu0 %818  ;;  %923 = vrot.lane.b32.xlu1 %v3142_v40, %s2520_s19  ;;  %v811_v25 = vpop.permute.xlu1 %810 }
 0x172   : > { %v824_v45 = vsel %vm376_vm1, %v811_v25, %v819_v23  ;;  %v828_v61 = vsel %vm376_vm1, %v803_v15, %v811_v25  ;;  %v836_v7 = vsel %vm376_vm1, %v819_v23, %v795_v57  ;;  %v1022_v57 = vld [vmem:[%s4114_s4 + $0x8] sm:$0xff] }
 0x173   : > { %v3151_v4 = vmax.f32 %v3031_v34, %v828_v61  ;;  %v3154_v62 = vmax.f32 %v3056_v19, %v824_v45  ;;  %v3165_v34 = vmax.f32 %v3051_v47, %v836_v7  ;;  %v1030_v25 = vld [vmem:[%s4114_s4 + $0x48] sm:$0xff]  ;;  %v1024_v45 = vld [vmem:[%s4114_s4 + $0x18] sm:$0xff] }
 0x175   : > { %v801_v31 = vpop.permute.xlu0 %800  ;;  %931 = vrot.lane.b32.xlu0 %v3151_v4, %s2520_s19  ;;  %939 = vrot.lane.b32.xlu1 %v3154_v62, %s2520_s19  ;;  %v793_v8 = vpop.permute.xlu1 %792 }
 0x176   : > { %v831_v14 = vsel %vm376_vm1, %v793_v8, %v801_v31 }
 0x177   : > { %v3168_v19 = vmax.f32 %v3075_v41, %v831_v14 }
 0x179   : > { %v817_v12 = vpop.permute.xlu0 %816  ;;  %947 = vrot.lane.b32.xlu0 %v3165_v34, %s2520_s19  ;;  %921 = vrot.lane.b32.xlu1 %v3168_v19, %s2520_s19  ;;  %v809_v48 = vpop.permute.xlu1 %808 }
 0x17a   : > { %v823_v37 = vsel %vm376_vm1, %v809_v48, %v817_v12  ;;  %v827_v51 = vsel %vm376_vm1, %v801_v31, %v809_v48  ;;  %v835_v10 = vsel %vm376_vm1, %v817_v12, %v793_v8  ;;  %v1031_v31 = vld [vmem:[%s4114_s4 + $0x50] sm:$0xff]  ;;  %v1025_v8 = vld [vmem:[%s4114_s4 + $0x20] sm:$0xff] }
 0x17b   : > { %v3179_v47 = vmax.f32 %v3070_v6, %v827_v51  ;;  %v3182_v41 = vmax.f32 %v3095_v21, %v823_v37  ;;  %v3193_v6 = vmax.f32 %v3090_v9, %v835_v10 }
 0x17d   : > { %v799_v2 = vpop.permute.xlu0 %798  ;;  %929 = vrot.lane.b32.xlu0 %v3179_v47, %s2520_s19  ;;  %937 = vrot.lane.b32.xlu1 %v3182_v41, %s2520_s19  ;;  %v791_v29 = vpop.permute.xlu1 %790 }
 0x17e   : > { %v830_v54 = vsel %vm376_vm1, %v791_v29, %v799_v2 }
 0x17f   : > { %v3195_v49 = vmax.f32 %v774_v36, %v830_v54 }
 0x181   : > { %v815_v30 = vpop.permute.xlu0 %814  ;;  %945 = vrot.lane.b32.xlu0 %v3193_v6, %s2520_s19  ;;  %919 = vrot.lane.b32.xlu1 %v3195_v49, %s2520_s19  ;;  %v807_v3 = vpop.permute.xlu1 %806 }
 0x182   : > { %v822_v32 = vsel %vm376_vm1, %v807_v3, %v815_v30  ;;  %v826_v22 = vsel %vm376_vm1, %v799_v2, %v807_v3  ;;  %v834_v42 = vsel %vm376_vm1, %v815_v30, %v791_v29  ;;  %v1032_v2 = vld [vmem:[%s4114_s4 + $0x58] sm:$0xff]  ;;  %v1026_v29 = vld [vmem:[%s4114_s4 + $0x28] sm:$0xff] }
 0x183   : > { %v3206_v33 = vmax.f32 %v3101_v58, %v826_v22  ;;  %v3208_v9 = vmax.f32 %v776_v26, %v822_v32  ;;  %v3217_v21 = vmax.f32 %v3106_v1, %v834_v42  ;;  %v4170_v26 = vld [vmem:[#allocation7_spill] sm:$0xff] }
 0x184   : > { %v3256_v20 = vrot.slane %v2124_v44, %v4170_v26  ;;  %v1033_v44 = vld [vmem:[%s4114_s4 + $0x60] sm:$0xff] }
 0x185   : > { %927 = vrot.lane.b32.xlu0 %v3206_v33, %s2520_s19  ;;  %935 = vrot.lane.b32.xlu1 %v3208_v9, %s2520_s19 }
 0x189   : > { %943 = vrot.lane.b32.xlu0 %v3217_v21, %s2520_s19  ;;  %860 = vrot.lane.b32.xlu1 %v3114_v55, %s2521_s10 }
 0x18d   : > { %868 = vrot.lane.b32.xlu0 %v3123_v27, %s2521_s10  ;;  %876 = vrot.lane.b32.xlu1 %v3126_v5, %s2521_s10 }
 0x191   : > { %884 = vrot.lane.b32.xlu0 %v3135_v59, %s2521_s10  ;;  %858 = vrot.lane.b32.xlu1 %v3142_v40, %s2521_s10 }
 0x195   : > { %866 = vrot.lane.b32.xlu0 %v3151_v4, %s2521_s10  ;;  %874 = vrot.lane.b32.xlu1 %v3154_v62, %s2521_s10 }
 0x199   : > { %882 = vrot.lane.b32.xlu0 %v3165_v34, %s2521_s10  ;;  %856 = vrot.lane.b32.xlu1 %v3168_v19, %s2521_s10 }
 0x19d   : > { %864 = vrot.lane.b32.xlu0 %v3179_v47, %s2521_s10  ;;  %872 = vrot.lane.b32.xlu1 %v3182_v41, %s2521_s10 }
 0x1a1   : > { %880 = vrot.lane.b32.xlu0 %v3193_v6, %s2521_s10  ;;  %854 = vrot.lane.b32.xlu1 %v3195_v49, %s2521_s10 }
 0x1a5   : > { %862 = vrot.lane.b32.xlu0 %v3206_v33, %s2521_s10  ;;  %870 = vrot.lane.b32.xlu1 %v3208_v9, %s2521_s10 }
 0x1a9   : > { %878 = vrot.lane.b32.xlu0 %v3217_v21, %s2521_s10  ;;  %1039 = vperm.xlu1 %2370, %v1021_v13  }
 0x1ad   : > { %1079 = vperm.xlu0 %2371, %v1029_v43   ;;  %1044 = vperm.xlu1 %2370, %v1022_v57   ;;  %v1035_v43 = vld [vmem:[%s4114_s4 + $0x70] sm:$0xff] }
 0x1b1   : > { %1049 = vperm.xlu0 %2371, %v1023_v39   ;;  %1084 = vperm.xlu1 %2370, %v1030_v25  }
 0x1b5   : > { %1054 = vperm.xlu0 %2371, %v1024_v45   ;;  %1089 = vperm.xlu1 %2370, %v1031_v31   ;;  %v1036_v45 = vld [vmem:[%s4114_s4 + $0x78] sm:$0xff] }
 0x1b9   : > { %1059 = vperm.xlu0 %2371, %v1025_v8   ;;  %1094 = vperm.xlu1 %2370, %v1032_v2  }
 0x1bd   : > { %1064 = vperm.xlu0 %2371, %v1026_v29   ;;  %1099 = vperm.xlu1 %2370, %v1033_v44  }
 0x1d5   : > { %v926_v24 = vpop.permute.xlu1 %925 }
 0x1d9   : > { %v934_v58 = vpop.permute.xlu0 %933  ;;  %v942_v46 = vpop.permute.xlu1 %941 }
 0x1da   : > { %v963_v36 = vsel %vm951_vm2, %v926_v24, %v934_v58  ;;  %v959_v50 = vsel %vm951_vm2, %v934_v58, %v942_v46 }
 0x1db   : > { %v1002_v38 = vmul.f32 %v3244_v35, %v959_v50  ;;  %v1001_v1 = vmul.f32 %v3247_v52, %v963_v36 }
 0x1dd   : > { %v950_v60 = vpop.permute.xlu0 %949  ;;  %1174 = vmatprep.subr.mxu0 %v1002_v38  ;;  %v1034_v38 = vld [vmem:[%s4114_s4 + $0x68] sm:$0xff] }
 0x1de   : > { %v955_v17 = vsel %vm951_vm2, %v942_v46, %v950_v60  ;;  %1175 = vmatpush1.msra.mxu0 %v1001_v1  ;;  %v967_v18 = vsel %vm951_vm2, %v950_v60, %v926_v24  ;;  %v1027_v24 = vld [vmem:[%s4114_s4 + $0x30] sm:$0xff]  ;;  %v1028_v1 = vld [vmem:[%s4114_s4 + $0x38] sm:$0xff]  ;;  %1104 = vperm.xlu1 %2370, %v1034_v38  }
 0x1df   : > { %v1004_v11 = vmul.f32 %v3256_v20, %v967_v18  ;;  %v1003_v15 = vmul.f32 %v3259_v0, %v955_v17  ;;  %1069 = vperm.xlu0 %2371, %v1027_v24  }
 0x1e1   : > { %1335 = vmatprep.subr.mxu1 %v1004_v11 }
 0x1e2   : > { %1336 = vmatpush1.msra.mxu1 %v1003_v15  ;;  %1109 = vperm.xlu1 %2370, %v1035_v43   ;;  %v1005_v43 = vld [vmem:[%s4113_s3] sm:$0xff] }
 0x1e3   : > { %v924_v23 = vpop.permute.xlu1 %923  ;;  %1074 = vperm.xlu0 %2371, %v1028_v1  }
 0x1e6   : > { %1114 = vperm.xlu1 %2370, %v1036_v45   ;;  %v1011_v45 = vld [vmem:[%s4113_s3 + $0x30] sm:$0xff] }
 0x1e7   : > { %v932_v61 = vpop.permute.xlu0 %931  ;;  %v940_v7 = vpop.permute.xlu1 %939 }
 0x1e8   : > { %v962_v14 = vsel %vm951_vm2, %v924_v23, %v932_v61  ;;  %v958_v12 = vsel %vm951_vm2, %v932_v61, %v940_v7 }
 0x1e9   : > { %v997_v48 = vmul.f32 %v3247_v52, %v962_v14  ;;  %v998_v37 = vmul.f32 %v3244_v35, %v958_v12 }
 0x1eb   : > { %v948_v51 = vpop.permute.xlu0 %947  ;;  %1176 = vmatprep.subr.mxu0 %v998_v37  ;;  %v922_v10 = vpop.permute.xlu1 %921 }
 0x1ec   : > { %v954_v54 = vsel %vm951_vm2, %v940_v7, %v948_v51  ;;  %v966_v30 = vsel %vm951_vm2, %v948_v51, %v924_v23  ;;  %1177 = vmatpush1.msra.mxu0 %v997_v48 }
 0x1ed   : > { %v999_v3 = vmul.f32 %v3259_v0, %v954_v54  ;;  %v1000_v32 = vmul.f32 %v3256_v20, %v966_v30 }
 0x1ef   : > { %v930_v22 = vpop.permute.xlu0 %929  ;;  %1337 = vmatprep.subr.mxu1 %v1000_v32  ;;  %v938_v42 = vpop.permute.xlu1 %937 }
 0x1f0   : > { %v961_v16 = vsel %vm951_vm2, %v922_v10, %v930_v22  ;;  %v957_v53 = vsel %vm951_vm2, %v930_v22, %v938_v42  ;;  %1338 = vmatpush1.msra.mxu1 %v999_v3 }
 0x1f1   : > { %v993_v58 = vmul.f32 %v3247_v52, %v961_v16  ;;  %v994_v46 = vmul.f32 %v3244_v35, %v957_v53 }
 0x1f3   : > { %v946_v36 = vpop.permute.xlu0 %945  ;;  %1178 = vmatprep.subr.mxu0 %v994_v46  ;;  %v920_v50 = vpop.permute.xlu1 %919 }
 0x1f4   : > { %v953_v26 = vsel %vm951_vm2, %v938_v42, %v946_v36  ;;  %v965_v63 = vsel %vm951_vm2, %v946_v36, %v922_v10  ;;  %1179 = vmatpush1.msra.mxu0 %v993_v58 }
 0x1f5   : > { %v995_v60 = vmul.f32 %v3259_v0, %v953_v26  ;;  %v996_v17 = vmul.f32 %v3256_v20, %v965_v63 }
 0x1f7   : > { %v928_v18 = vpop.permute.xlu0 %927  ;;  %1339 = vmatprep.subr.mxu1 %v996_v17  ;;  %v936_v13 = vpop.permute.xlu1 %935 }
 0x1f8   : > { %v960_v11 = vsel %vm951_vm2, %v920_v50, %v928_v18  ;;  %v956_v15 = vsel %vm951_vm2, %v928_v18, %v936_v13  ;;  %1340 = vmatpush1.msra.mxu1 %v995_v60 }
 0x1f9   : > { %v989_v57 = vmul.f32 %v3247_v52, %v960_v11  ;;  %v990_v39 = vmul.f32 %v3244_v35, %v956_v15  ;;  %v1006_v15 = vld [vmem:[%s4113_s3 + $0x8] sm:$0xff] }
 0x1fb   : > { %v944_v23 = vpop.permute.xlu0 %943  ;;  %1180 = vmatprep.subr.mxu0 %v990_v39  ;;  %v861_v25 = vpop.permute.xlu1 %860  ;;  %v1008_v39 = vld [vmem:[%s4113_s3 + $0x18] sm:$0xff] }
 0x1fc   : > { %v952_v61 = vsel %vm951_vm2, %v936_v13, %v944_v23  ;;  %v964_v7 = vsel %vm951_vm2, %v944_v23, %v920_v50  ;;  %1181 = vmatpush1.msra.mxu0 %v989_v57  ;;  %v1007_v57 = vld [vmem:[%s4113_s3 + $0x10] sm:$0xff]  ;;  %v1009_v23 = vld [vmem:[%s4113_s3 + $0x20] sm:$0xff] }
 0x1fd   : > { %v991_v52 = vmul.f32 %v3259_v0, %v952_v61  ;;  %v992_v35 = vmul.f32 %v3256_v20, %v964_v7  ;;  %1182 = vmatprep.subr.mxu0 %v3123_v27  ;;  %v1012_v61 = vld [vmem:[%s4113_s3 + $0x38] sm:$0xff]  ;;  %v1013_v7 = vld [vmem:[%s4113_s3 + $0x40] sm:$0xff] }
 0x1fe   : > { %1183 = vmatpush1.msra.mxu0 %v3114_v55  ;;  %v4172_v55 = vld [vmem:[#allocation10_spill] sm:$0xff] }
 0x1ff   : > { %v869_v31 = vpop.permute.xlu0 %868  ;;  %1184 = vmatprep.subr.mxu0 %v3151_v4  ;;  %1341 = vmatprep.subr.mxu1 %v992_v35  ;;  %v877_v8 = vpop.permute.xlu1 %876  ;;  %v1015_v35 = vld [vmem:[%s4113_s3 + $0x50] sm:$0xff] }
 0x200   : > { %v898_v14 = vsel %vm886_vm3, %v861_v25, %v869_v31  ;;  %1185 = vmatpush1.msra.mxu0 %v3142_v40  ;;  %1342 = vmatpush1.msra.mxu1 %v991_v52  ;;  %v1014_v52 = vld [vmem:[%s4113_s3 + $0x48] sm:$0xff] }
 0x201   : > { %1186 = vmatprep.subr.mxu0 %v3179_v47  ;;  %1343 = vmatprep.subr.mxu1 %v3135_v59  ;;  %v916_v27 = vmul.f32 %v898_v14, %v4172_v55  ;;  %v4173_v59 = vld [vmem:[#allocation12_spill] sm:$0xff] }
 0x202   : > { %1187 = vmatpush1.msra.mxu0 %v3168_v19  ;;  %1344 = vmatpush1.msra.mxu1 %v3126_v5  ;;  %v894_v5 = vsel %vm886_vm3, %v869_v31, %v877_v8  ;;  %v1016_v31 = vld [vmem:[%s4113_s3 + $0x58] sm:$0xff]  ;;  %v1018_v14 = vld [vmem:[%s4113_s3 + $0x68] sm:$0xff] }
 0x203   : > { %v885_v20 = vpop.permute.xlu0 %884  ;;  %1188 = vmatprep.subr.mxu0 %v3206_v33  ;;  %1345 = vmatprep.subr.mxu1 %v3165_v34  ;;  %v859_v4 = vpop.permute.xlu1 %858  ;;  %v4174_v34 = vld [vmem:[#allocation13_spill] sm:$0xff] }
 0x204   : > { %v890_v40 = vsel %vm886_vm3, %v877_v8, %v885_v20  ;;  %v902_v47 = vsel %vm886_vm3, %v885_v20, %v861_v25  ;;  %1189 = vmatpush1.msra.mxu0 %v3195_v49  ;;  %1346 = vmatpush1.msra.mxu1 %v3154_v62  ;;  %v4175_v49 = vld [vmem:[#allocation11_spill] sm:$0xff]  ;;  %v1010_v25 = vld [vmem:[%s4113_s3 + $0x28] sm:$0xff]  ;;  %v1679_v20 = vld [vmem:[%s4115_s5 + $0xf8] sm:$0xff] }
 0x205   : > { %v915_v19 = vmul.f32 %v902_v47, %v4173_v59  ;;  %1190 = vmatprep.subr.mxu0 %v916_v27  ;;  %1347 = vmatprep.subr.mxu1 %v3193_v6  ;;  %v918_v33 = vmul.f32 %v890_v40, %v4174_v34  ;;  %v917_v48 = vmul.f32 %v894_v5, %v4175_v49  ;;  %v1017_v8 = vld [vmem:[%s4113_s3 + $0x60] sm:$0xff]  ;;  %v1020_v27 = vld [vmem:[%s4113_s3 + $0x78] sm:$0xff]  ;;  %v1678_v5 = vld [vmem:[%s4115_s5 + $0xf0] sm:$0xff] }
 0x206   : > { %1348 = vmatpush1.msra.mxu1 %v3182_v41  ;;  %v1663_v40 = vld [vmem:[%s4115_s5 + $0x78] sm:$0xff] }
 0x207   : > { %v867_v0 = vpop.permute.xlu0 %866  ;;  %1191 = vmatpush1.msra.mxu0 %v915_v19  ;;  %1349 = vmatprep.subr.mxu1 %v3217_v21  ;;  %v875_v12 = vpop.permute.xlu1 %874  ;;  %v1695_v47 = vld [vmem:[%s4115_s5 + $0x178] sm:$0xff]  ;;  %v1662_v19 = vld [vmem:[%s4115_s5 + $0x70] sm:$0xff] }
 0x208   : > { %v897_v62 = vsel %vm886_vm3, %v859_v4, %v867_v0  ;;  %1350 = vmatpush1.msra.mxu1 %v3208_v9  ;;  %v893_v41 = vsel %vm886_vm3, %v867_v0, %v875_v12  ;;  %v1709_v0 = vld [vmem:[%s4115_s5 + $0x1e8] sm:$0xff] }
 0x209   : > { %v912_v37 = vmul.f32 %v897_v62, %v4172_v55  ;;  %1351 = vmatprep.subr.mxu1 %v918_v33  ;;  %v913_v29 = vmul.f32 %v893_v41, %v4175_v49  ;;  %v1677_v33 = vld [vmem:[%s4115_s5 + $0xe8] sm:$0xff]  ;;  %v1708_v62 = vld [vmem:[%s4115_s5 + $0x1e0] sm:$0xff] }
 0x20a   : > { %1352 = vmatpush1.msra.mxu1 %v917_v48  ;;  %v1676_v48 = vld [vmem:[%s4115_s5 + $0xe0] sm:$0xff] }
 0x20b   : > { %v883_v6 = vpop.permute.xlu0 %882  ;;  %1192 = vmatprep.subr.mxu0 %v912_v37  ;;  %v857_v51 = vpop.permute.xlu1 %856  ;;  %v1660_v37 = vld [vmem:[%s4115_s5 + $0x60] sm:$0xff] }
 0x20c   : > { %v889_v21 = vsel %vm886_vm3, %v875_v12, %v883_v6  ;;  %v901_v10 = vsel %vm886_vm3, %v883_v6, %v859_v4  ;;  %v1711_v4 = vld [vmem:[%s4115_s5 + $0x1f8] sm:$0xff]  ;;  %v1661_v12 = vld [vmem:[%s4115_s5 + $0x68] sm:$0xff]  ;;  %v1692_v41 = vld [vmem:[%s4115_s5 + $0x160] sm:$0xff] }
 0x20d   : > { %v911_v2 = vmul.f32 %v901_v10, %v4173_v59  ;;  %v914_v9 = vmul.f32 %v889_v21, %v4174_v34  ;;  %v1675_v6 = vld [vmem:[%s4115_s5 + $0xd8] sm:$0xff] }
 0x20e   : > { %v1659_v21 = vld [vmem:[%s4115_s5 + $0x58] sm:$0xff] }
 0x20f   : > { %v865_v54 = vpop.permute.xlu0 %864  ;;  %1193 = vmatpush1.msra.mxu0 %v911_v2  ;;  %1353 = vmatprep.subr.mxu1 %v914_v9  ;;  %v873_v30 = vpop.permute.xlu1 %872  ;;  %v1691_v10 = vld [vmem:[%s4115_s5 + $0x158] sm:$0xff]  ;;  %v1674_v2 = vld [vmem:[%s4115_s5 + $0xd0] sm:$0xff] }
 0x210   : > { %v896_v3 = vsel %vm886_vm3, %v857_v51, %v865_v54  ;;  %1354 = vmatpush1.msra.mxu1 %v913_v29  ;;  %v892_v22 = vsel %vm886_vm3, %v865_v54, %v873_v30  ;;  %v1706_v9 = vld [vmem:[%s4115_s5 + $0x1d0] sm:$0xff] }
 0x211   : > { %v908_v32 = vmul.f32 %v896_v3, %v4172_v55  ;;  %v909_v46 = vmul.f32 %v892_v22, %v4175_v49  ;;  %v1658_v29 = vld [vmem:[%s4115_s5 + $0x50] sm:$0xff]  ;;  %v1705_v3 = vld [vmem:[%s4115_s5 + $0x1c8] sm:$0xff] }
 0x212   : > { %v1690_v54 = vld [vmem:[%s4115_s5 + $0x150] sm:$0xff]  ;;  %v1689_v22 = vld [vmem:[%s4115_s5 + $0x148] sm:$0xff] }
 0x213   : > { %v881_v42 = vpop.permute.xlu0 %880  ;;  %1194 = vmatprep.subr.mxu0 %v908_v32  ;;  %v855_v44 = vpop.permute.xlu1 %854  ;;  %v1657_v32 = vld [vmem:[%s4115_s5 + $0x48] sm:$0xff] }
 0x214   : > { %v888_v24 = vsel %vm886_vm3, %v873_v30, %v881_v42  ;;  %v900_v16 = vsel %vm886_vm3, %v881_v42, %v857_v51  ;;  %v1707_v51 = vld [vmem:[%s4115_s5 + $0x1d8] sm:$0xff]  ;;  %v1673_v30 = vld [vmem:[%s4115_s5 + $0xc8] sm:$0xff]  ;;  %v1672_v42 = vld [vmem:[%s4115_s5 + $0xc0] sm:$0xff] }
 0x215   : > { %v907_v53 = vmul.f32 %v900_v16, %v4173_v59  ;;  %v910_v58 = vmul.f32 %v888_v24, %v4174_v34  ;;  %v1656_v24 = vld [vmem:[%s4115_s5 + $0x40] sm:$0xff] }
 0x216   : > { %v1688_v16 = vld [vmem:[%s4115_s5 + $0x140] sm:$0xff] }
 0x217   : > { %v863_v36 = vpop.permute.xlu0 %862  ;;  %1195 = vmatpush1.msra.mxu0 %v907_v53  ;;  %1355 = vmatprep.subr.mxu1 %v910_v58  ;;  %v871_v38 = vpop.permute.xlu1 %870  ;;  %v1671_v53 = vld [vmem:[%s4115_s5 + $0xb8] sm:$0xff] }
 0x218   : > { %v895_v50 = vsel %vm886_vm3, %v855_v44, %v863_v36  ;;  %1356 = vmatpush1.msra.mxu1 %v909_v46  ;;  %v891_v26 = vsel %vm886_vm3, %v863_v36, %v871_v38  ;;  %v1703_v58 = vld [vmem:[%s4115_s5 + $0x1b8] sm:$0xff] }
 0x219   : > { %v904_v1 = vmul.f32 %v895_v50, %v4172_v55  ;;  %v905_v11 = vmul.f32 %v891_v26, %v4175_v49  ;;  %v1019_v55 = vld [vmem:[%s4113_s3 + $0x70] sm:$0xff]  ;;  %v1693_v49 = vld [vmem:[%s4115_s5 + $0x168] sm:$0xff]  ;;  %v1655_v46 = vld [vmem:[%s4115_s5 + $0x38] sm:$0xff] }
 0x21a   : > { %v1687_v36 = vld [vmem:[%s4115_s5 + $0x138] sm:$0xff]  ;;  %v1670_v50 = vld [vmem:[%s4115_s5 + $0xb0] sm:$0xff] }
 0x21b   : > { %v879_v63 = vpop.permute.xlu0 %878  ;;  %1196 = vmatprep.subr.mxu0 %v904_v1  ;;  %v1654_v1 = vld [vmem:[%s4115_s5 + $0x30] sm:$0xff] }
 0x21c   : > { %v887_v60 = vsel %vm886_vm3, %v871_v38, %v879_v63  ;;  %v899_v17 = vsel %vm886_vm3, %v879_v63, %v855_v44  ;;  %v1704_v44 = vld [vmem:[%s4115_s5 + $0x1c0] sm:$0xff]  ;;  %v1702_v38 = vld [vmem:[%s4115_s5 + $0x1b0] sm:$0xff]  ;;  %v1669_v63 = vld [vmem:[%s4115_s5 + $0xa8] sm:$0xff] }
 0x21d   : > { %v903_v18 = vmul.f32 %v899_v17, %v4173_v59  ;;  %v906_v13 = vmul.f32 %v887_v60, %v4174_v34  ;;  %v1710_v59 = vld [vmem:[%s4115_s5 + $0x1f0] sm:$0xff]  ;;  %v1701_v60 = vld [vmem:[%s4115_s5 + $0x1a8] sm:$0xff] }
 0x21e   : > { %v1694_v34 = vld [vmem:[%s4115_s5 + $0x170] sm:$0xff]  ;;  %v1653_v17 = vld [vmem:[%s4115_s5 + $0x28] sm:$0xff] }
 0x21f   : > { %1197 = vmatpush1.msra.mxu0 %v903_v18  ;;  %1357 = vmatprep.subr.mxu1 %v906_v13  ;;  %v1686_v26 = vld [vmem:[%s4115_s5 + $0x130] sm:$0xff]  ;;  %v1685_v18 = vld [vmem:[%s4115_s5 + $0x128] sm:$0xff]  ;;  %v1668_v13 = vld [vmem:[%s4115_s5 + $0xa0] sm:$0xff] }
 0x220   : > { %2125 = vmatmul.mubr.msk.f32.vlgmr.msra.gmra.mxu0 %vm1117_vm4, %v1005_v43  ;;  %1358 = vmatpush1.msra.mxu1 %v905_v11  ;;  %v1652_v11 = vld [vmem:[%s4115_s5 + $0x20] sm:$0xff] }
 0x221   : > { %2141 = vmatmul.mubr.msk.f32.vlgmr.msra.gmra.mxu1 %vm1117_vm4, %v1005_v43  ;;  %1236 = vmatprep.mubr.f32.mxu0 %v2522_v28  ;;  %v1700_v43 = vld [vmem:[%s4115_s5 + $0x1a0] sm:$0xff] }
 0x222   : > { %1397 = vmatprep.mubr.f32.mxu1 %v2522_v28  ;;  %2163 = vmatprep.subr.mxu0 %v1679_v20 }
 0x223   : > { %2219 = vmatprep.subr.mxu1 %v1711_v4  ;;  %2164 = vmatpush3.msra.mxu0 %v1663_v40 }
 0x224   : > { %2126 = vmatmul.mubr.msk.f32.gmra.mxu0 %vm1117_vm4, %v1006_v15  ;;  %2220 = vmatpush3.msra.mxu1 %v1695_v47 }
 0x225   : > { %2142 = vmatmul.mubr.msk.f32.gmra.mxu1 %vm1117_vm4, %v1006_v15  ;;  %1242 = vmatprep.mubr.f32.mxu0 %v2522_v28  ;;  %v1684_v15 = vld [vmem:[%s4115_s5 + $0x120] sm:$0xff] }
 0x226   : > { %1403 = vmatprep.mubr.f32.mxu1 %v2522_v28  ;;  %2165 = vmatprep.subr.mxu0 %v1678_v5 }
 0x227   : > { %2221 = vmatprep.subr.mxu1 %v1710_v59  ;;  %2166 = vmatpush3.msra.mxu0 %v1662_v19 }
 0x228   : > { %2127 = vmatmul.mubr.msk.f32.gmra.mxu0 %vm1117_vm4, %v1007_v57  ;;  %2222 = vmatpush3.msra.mxu1 %v1694_v34 }
 0x229   : > { %2143 = vmatmul.mubr.msk.f32.gmra.mxu1 %vm1117_vm4, %v1007_v57  ;;  %1248 = vmatprep.mubr.f32.mxu0 %v2522_v28  ;;  %v1667_v57 = vld [vmem:[%s4115_s5 + $0x98] sm:$0xff] }
 0x22a   : > { %1409 = vmatprep.mubr.f32.mxu1 %v2522_v28  ;;  %2167 = vmatprep.subr.mxu0 %v1677_v33 }
 0x22b   : > { %2223 = vmatprep.subr.mxu1 %v1709_v0  ;;  %2168 = vmatpush3.msra.mxu0 %v1661_v12  ;;  %v1040_v12 = vpop.permute.xlu1 %1039 }
 0x22c   : > { %2128 = vmatmul.mubr.msk.f32.gmra.mxu0 %vm1117_vm4, %v1008_v39  ;;  %2224 = vmatpush3.msra.mxu1 %v1693_v49 }
 0x22d   : > { %2144 = vmatmul.mubr.msk.f32.gmra.mxu1 %vm1117_vm4, %v1008_v39  ;;  %1254 = vmatprep.mubr.f32.mxu0 %v2522_v28  ;;  %v1699_v39 = vld [vmem:[%s4115_s5 + $0x198] sm:$0xff] }
 0x22e   : > { %1415 = vmatprep.mubr.f32.mxu1 %v2522_v28  ;;  %2169 = vmatprep.subr.mxu0 %v1676_v48 }
 0x22f   : > { %2225 = vmatprep.subr.mxu1 %v1708_v62  ;;  %2170 = vmatpush3.msra.mxu0 %v1660_v37 }
 0x230   : > { %2129 = vmatmul.mubr.msk.f32.gmra.mxu0 %vm1117_vm4, %v1009_v23  ;;  %2226 = vmatpush3.msra.mxu1 %v1692_v41 }
 0x231   : > { %2145 = vmatmul.mubr.msk.f32.gmra.mxu1 %vm1117_vm4, %v1009_v23  ;;  %1260 = vmatprep.mubr.f32.mxu0 %v2522_v28  ;;  %v1651_v23 = vld [vmem:[%s4115_s5 + $0x18] sm:$0xff] }
 0x232   : > { %1421 = vmatprep.mubr.f32.mxu1 %v2522_v28  ;;  %2171 = vmatprep.subr.mxu0 %v1675_v6 }
 0x233   : > { %2227 = vmatprep.subr.mxu1 %v1707_v51  ;;  %2172 = vmatpush3.msra.mxu0 %v1659_v21  ;;  %v1045_v51 = vpop.permute.xlu1 %1044 }
 0x234   : > { %2130 = vmatmul.mubr.msk.f32.gmra.mxu0 %vm1117_vm4, %v1010_v25  ;;  %2228 = vmatpush3.msra.mxu1 %v1691_v10 }
 0x235   : > { %2146 = vmatmul.mubr.msk.f32.gmra.mxu1 %vm1117_vm4, %v1010_v25  ;;  %1266 = vmatprep.mubr.f32.mxu0 %v2522_v28  ;;  %v1683_v25 = vld [vmem:[%s4115_s5 + $0x118] sm:$0xff] }
 0x236   : > { %1427 = vmatprep.mubr.f32.mxu1 %v2522_v28  ;;  %2173 = vmatprep.subr.mxu0 %v1674_v2 }
 0x237   : > { %2229 = vmatprep.subr.mxu1 %v1706_v9  ;;  %2174 = vmatpush3.msra.mxu0 %v1658_v29 }
 0x238   : > { %2131 = vmatmul.mubr.msk.f32.gmra.mxu0 %vm1117_vm4, %v1011_v45  ;;  %2230 = vmatpush3.msra.mxu1 %v1690_v54  ;;  %v1080_v54 = vpop.permute.xlu0 %1079 }
 0x239   : > { %2147 = vmatmul.mubr.msk.f32.gmra.mxu1 %vm1117_vm4, %v1011_v45  ;;  %1272 = vmatprep.mubr.f32.mxu0 %v2522_v28  ;;  %v1666_v45 = vld [vmem:[%s4115_s5 + $0x90] sm:$0xff] }
 0x23a   : > { %1433 = vmatprep.mubr.f32.mxu1 %v2522_v28  ;;  %2175 = vmatprep.subr.mxu0 %v1673_v30 }
 0x23b   : > { %2231 = vmatprep.subr.mxu1 %v1705_v3  ;;  %2176 = vmatpush3.msra.mxu0 %v1657_v32  ;;  %v1085_v3 = vpop.permute.xlu1 %1084 }
 0x23c   : > { %2132 = vmatmul.mubr.msk.f32.gmra.mxu0 %vm1117_vm4, %v1012_v61  ;;  %2232 = vmatpush3.msra.mxu1 %v1689_v22 }
 0x23d   : > { %2148 = vmatmul.mubr.msk.f32.gmra.mxu1 %vm1117_vm4, %v1012_v61  ;;  %1278 = vmatprep.mubr.f32.mxu0 %v2522_v28  ;;  %v1698_v61 = vld [vmem:[%s4115_s5 + $0x190] sm:$0xff] }
 0x23e   : > { %1439 = vmatprep.mubr.f32.mxu1 %v2522_v28  ;;  %2177 = vmatprep.subr.mxu0 %v1672_v42 }
 0x23f   : > { %2233 = vmatprep.subr.mxu1 %v1704_v44  ;;  %2178 = vmatpush3.msra.mxu0 %v1656_v24 }
 0x240   : > { %2133 = vmatmul.mubr.msk.f32.gmra.mxu0 %vm1117_vm4, %v1013_v7  ;;  %2234 = vmatpush3.msra.mxu1 %v1688_v16  ;;  %v3756_v16 = vpop.permute.xlu0 %1049 }
 0x241   : > { %2149 = vmatmul.mubr.msk.f32.gmra.mxu1 %vm1117_vm4, %v1013_v7  ;;  %1284 = vmatprep.mubr.f32.mxu0 %v2522_v28  ;;  %v1650_v7 = vld [vmem:[%s4115_s5 + $0x10] sm:$0xff] }
 0x242   : > { %1445 = vmatprep.mubr.f32.mxu1 %v2522_v28  ;;  %2179 = vmatprep.subr.mxu0 %v1671_v53 }
 0x243   : > { %2235 = vmatprep.subr.mxu1 %v1703_v58  ;;  %2180 = vmatpush3.msra.mxu0 %v1655_v46  ;;  %v3760_v58 = vpop.permute.xlu1 %1089 }
 0x244   : > { %2134 = vmatmul.mubr.msk.f32.gmra.mxu0 %vm1117_vm4, %v1014_v52  ;;  %2236 = vmatpush3.msra.mxu1 %v1687_v36 }
 0x245   : > { %2150 = vmatmul.mubr.msk.f32.gmra.mxu1 %vm1117_vm4, %v1014_v52  ;;  %1290 = vmatprep.mubr.f32.mxu0 %v2522_v28  ;;  %v1682_v52 = vld [vmem:[%s4115_s5 + $0x110] sm:$0xff] }
 0x246   : > { %1451 = vmatprep.mubr.f32.mxu1 %v2522_v28  ;;  %2181 = vmatprep.subr.mxu0 %v1670_v50 }
 0x247   : > { %2237 = vmatprep.subr.mxu1 %v1702_v38  ;;  %2182 = vmatpush3.msra.mxu0 %v1654_v1  ;;  %v1664_v38 = vld [vmem:[%s4115_s5 + $0x80] sm:$0xff] }
 0x248   : > { %2135 = vmatmul.mubr.msk.f32.gmra.mxu0 %vm1117_vm4, %v1015_v35  ;;  %2238 = vmatpush3.msra.mxu1 %v1686_v26  ;;  %v1696_v1 = vld [vmem:[%s4115_s5 + $0x180] sm:$0xff] }
 0x249   : > { %2151 = vmatmul.mubr.msk.f32.gmra.mxu1 %vm1117_vm4, %v1015_v35  ;;  %1296 = vmatprep.mubr.f32.mxu0 %v2522_v28  ;;  %v1665_v35 = vld [vmem:[%s4115_s5 + $0x88] sm:$0xff]  ;;  %v1648_v26 = vld [vmem:[%s4115_s5] sm:$0xff] }
 0x24a   : > { %1457 = vmatprep.mubr.f32.mxu1 %v2522_v28  ;;  %2183 = vmatprep.subr.mxu0 %v1669_v63 }
 0x24b   : > { %2239 = vmatprep.subr.mxu1 %v1701_v60  ;;  %2184 = vmatpush3.msra.mxu0 %v1653_v17  ;;  %v1680_v17 = vld [vmem:[%s4115_s5 + $0x100] sm:$0xff] }
 0x24c   : > { %2136 = vmatmul.mubr.msk.f32.gmra.mxu0 %vm1117_vm4, %v1016_v31  ;;  %2240 = vmatpush3.msra.mxu1 %v1685_v18 }
 0x24d   : > { %2152 = vmatmul.mubr.msk.f32.gmra.mxu1 %vm1117_vm4, %v1016_v31  ;;  %1302 = vmatprep.mubr.f32.mxu0 %v2522_v28  ;;  %v1697_v31 = vld [vmem:[%s4115_s5 + $0x188] sm:$0xff] }
 0x24e   : > { %1463 = vmatprep.mubr.f32.mxu1 %v2522_v28  ;;  %2185 = vmatprep.subr.mxu0 %v1668_v13 }
 0x24f   : > { %2241 = vmatprep.subr.mxu1 %v1700_v43  ;;  %2186 = vmatpush3.msra.mxu0 %v1652_v11 }
 0x250   : > { %2137 = vmatmul.mubr.msk.f32.gmra.mxu0 %vm1117_vm4, %v1017_v8  ;;  %2242 = vmatpush3.msra.mxu1 %v1684_v15  ;;  %v3778_v15 = vpop.permute.xlu0 %1054 }
 0x251   : > { %2153 = vmatmul.mubr.msk.f32.gmra.mxu1 %vm1117_vm4, %v1017_v8  ;;  %1308 = vmatprep.mubr.f32.mxu0 %v2522_v28  ;;  %v1649_v8 = vld [vmem:[%s4115_s5 + $0x8] sm:$0xff] }
 0x252   : > { %1469 = vmatprep.mubr.f32.mxu1 %v2522_v28  ;;  %2187 = vmatprep.subr.mxu0 %v1667_v57 }
 0x253   : > { %2243 = vmatprep.subr.mxu1 %v1699_v39  ;;  %2188 = vmatpush3.msra.mxu0 %v1651_v23 }
 0x254   : > { %2138 = vmatmul.mubr.msk.f32.gmra.mxu0 %vm1117_vm4, %v1018_v14  ;;  %2244 = vmatpush3.msra.mxu1 %v1683_v25 }
 0x255   : > { %2154 = vmatmul.mubr.msk.f32.gmra.mxu1 %vm1117_vm4, %v1018_v14  ;;  %1314 = vmatprep.mubr.f32.mxu0 %v2522_v28  ;;  %v1681_v14 = vld [vmem:[%s4115_s5 + $0x108] sm:$0xff] }
 0x256   : > { %1475 = vmatprep.mubr.f32.mxu1 %v2522_v28  ;;  %2189 = vmatprep.subr.mxu0 %v1666_v45  ;;  %v3781_v45 = vpop.permute.xlu1 %1094 }
 0x257   : > { %2245 = vmatprep.subr.mxu1 %v1698_v61  ;;  %2190 = vmatpush3.msra.mxu0 %v1650_v7 }
 0x258   : > { %2139 = vmatmul.mubr.msk.f32.gmra.mxu0 %vm1117_vm4, %v1019_v55  ;;  %2246 = vmatpush3.msra.mxu1 %v1682_v52 }
 0x259   : > { %2155 = vmatmul.mubr.msk.f32.gmra.mxu1 %vm1117_vm4, %v1019_v55  ;;  %1320 = vmatprep.mubr.f32.mxu0 %v2522_v28 }
 0x25a   : > { %1481 = vmatprep.mubr.f32.mxu1 %v2522_v28  ;;  %2191 = vmatprep.subr.mxu0 %v1665_v35 }
 0x25b   : > { %2247 = vmatprep.subr.mxu1 %v1697_v31  ;;  %2192 = vmatpush3.msra.mxu0 %v1649_v8 }
 0x25c   : > { %2140 = vmatmul.mubr.msk.f32.gmra.mxu0 %vm1117_vm4, %v1020_v27  ;;  %2248 = vmatpush3.msra.mxu1 %v1681_v14 }
 0x25d   : > { %2156 = vmatmul.mubr.msk.f32.gmra.mxu1 %vm1117_vm4, %v1020_v27  ;;  %2193 = vmatprep.subr.mxu0 %v1664_v38 }
 0x25e   : > { %2249 = vmatprep.subr.mxu1 %v1696_v1  ;;  %2194 = vmatpush3.msra.mxu0 %v1648_v26 }
 0x25f   : > { %2250 = vmatpush3.msra.mxu1 %v1680_v17  ;;  %2284 = vmatprep.subr.mxu0 %v2522_v28 }
 0x2e0   : > { %v1232_v55 = vpop.f32.mrf.mxu0 }
 0x2e1   : > { %v1393_v27 = vpop.f32.mrf.mxu1  ;;  %v1233_v43 = vadd.f32 %v1232_v55, %v1040_v12 }
 0x2e2   : > { %v1234_v20 = vpop.f32.mrf.mxu0  ;;  %v1394_v23 = vadd.f32 %v1393_v27, %v1040_v12 }
 0x2e3   : > { %v1395_v4 = vpop.f32.mrf.mxu1  ;;  %v1235_v11 = vadd.f32 %v1234_v20, %v1040_v12 }
 0x2e4   : > { %v3706_v40 = vpop.f32.mrf.mxu0  ;;  %v1396_v25 = vadd.f32 %v1395_v4, %v1040_v12 }
 0x2e5   : > { %v3708_v47 = vpop.f32.mrf.mxu1  ;;  %v1239_v38 = vadd.f32 %v3706_v40, %v1045_v51 }
 0x2e6   : > { %v3710_v5 = vpop.f32.mrf.mxu0  ;;  %v1400_v1 = vadd.f32 %v3708_v47, %v1045_v51 }
 0x2e7   : > { %v3712_v59 = vpop.f32.mrf.mxu1  ;;  %v1241_v27 = vadd.f32 %v3710_v5, %v1045_v51 }
 0x2e8   : > { %v3714_v19 = vpop.f32.mrf.mxu0  ;;  %v1402_v26 = vadd.f32 %v3712_v59, %v1045_v51 }
 0x2e9   : > { %v3716_v34 = vpop.f32.mrf.mxu1 }
 0x2ea   : > { %v3718_v33 = vpop.f32.mrf.mxu0 }
 0x2eb   : > { %v3720_v0 = vpop.f32.mrf.mxu1 }
 0x2ec   : > { %v3722_v49 = vpop.f32.mrf.mxu0 }
 0x2ed   : > { %v3724_v48 = vpop.f32.mrf.mxu1 }
 0x2ee   : > { %v3726_v62 = vpop.f32.mrf.mxu0 }
 0x2ef   : > { %v3728_v37 = vpop.f32.mrf.mxu1 }
 0x2f0   : > { %v3730_v41 = vpop.f32.mrf.mxu0 }
 0x2f1   : > { %v3732_v6 = vpop.f32.mrf.mxu1 }
 0x2f2   : > { %v3734_v21 = vpop.f32.mrf.mxu0 }
 0x2f3   : > { %v3736_v10 = vpop.f32.mrf.mxu1 }
 0x2f4   : > { %v3738_v2 = vpop.f32.mrf.mxu0 }
 0x2f5   : > { %v3740_v9 = vpop.f32.mrf.mxu1 }
 0x2f6   : > { %v3742_v29 = vpop.f32.mrf.mxu0 }
 0x2f7   : > { %v3744_v30 = vpop.f32.mrf.mxu1 }
 0x2f8   : > { %v3746_v32 = vpop.f32.mrf.mxu0 }
 0x2f9   : > { %v3748_v22 = vpop.f32.mrf.mxu1 }
 0x2fa   : > { %v3750_v42 = vpop.f32.mrf.mxu0 }
 0x2fb   : > { %v3752_v44 = vpop.f32.mrf.mxu1 }
 0x2fc   : > { %v3754_v24 = vpop.f32.mrf.mxu0 }
 0x2fd   : > { %v3758_v53 = vpop.f32.mrf.mxu1 }
 0x2fe   : > { %v3762_v46 = vpop.f32.mrf.mxu0 }
 0x2ff   : > { %v3764_v36 = vpop.f32.mrf.mxu1 }
 0x300   : > { %v1280_v50 = vpop.f32.mrf.mxu0 }
 0x301   : > { %v1281_v63 = vadd.f32 %v1280_v50, %v1080_v54  ;;  %v1441_v60 = vpop.f32.mrf.mxu1 }
 0x302   : > { %v1442_v18 = vadd.f32 %v1441_v60, %v1080_v54  ;;  %v1282_v13 = vpop.f32.mrf.mxu0 }
 0x303   : > { %v1283_v57 = vadd.f32 %v1282_v13, %v1080_v54  ;;  %v1443_v39 = vpop.f32.mrf.mxu1  ;;  %v3783_v52 = vmax.f32 %v1233_v43, %v1281_v63 }
 0x304   : > { %v1444_v61 = vadd.f32 %v1443_v39, %v1080_v54  ;;  %v1286_v7 = vpop.f32.mrf.mxu0  ;;  %v3787_v14 = vmax.f32 %v1394_v23, %v1442_v18  ;;  %v1060_v18 = vpop.permute.xlu0 %1059  ;;  %v1245_v39 = vadd.f32 %v3714_v19, %v3756_v16 }
 0x305   : > { %v3785_v35 = vmax.f32 %v1235_v11, %v1283_v57  ;;  %v1287_v31 = vadd.f32 %v1286_v7, %v1085_v3  ;;  %v1447_v8 = vpop.f32.mrf.mxu1  ;;  %v1100_v11 = vpop.permute.xlu1 %1099  ;;  %v1406_v7 = vadd.f32 %v3716_v34, %v3756_v16 }
 0x306   : > { %v3789_v55 = vmax.f32 %v1396_v25, %v1444_v61  ;;  %v1448_v20 = vadd.f32 %v1447_v8, %v1085_v3  ;;  %v1288_v50 = vpop.f32.mrf.mxu0 }
 0x307   : > { %v1289_v4 = vadd.f32 %v1288_v50, %v1085_v3  ;;  %v1449_v12 = vpop.f32.mrf.mxu1  ;;  %v2372_v54 = vpack.i.bf16 %v3785_v35, %v3783_v52  ;;  %v3799_v13 = vmax.f32 %v1239_v38, %v1287_v31  ;;  %v1408_v31 = vadd.f32 %v3720_v0, %v3756_v16 }
 0x308   : > { %v2377_v63 = vpack.i.bf16 %v3789_v55, %v3787_v14  ;;  %v1450_v60 = vadd.f32 %v1449_v12, %v1085_v3  ;;  %v1292_v17 = vpop.f32.mrf.mxu0  ;;  %v3805_v57 = vmax.f32 %v1400_v1, %v1448_v20  ;;  %v1247_v3 = vadd.f32 %v3718_v33, %v3756_v16  ;;  %v1065_v12 = vpop.permute.xlu0 %1064 }
 0x309   : > { %v3801_v40 = vmax.f32 %v1241_v27, %v1289_v4  ;;  %v1293_v5 = vadd.f32 %v1292_v17, %v3760_v58  ;;  %v1453_v43 = vpop.f32.mrf.mxu1  ;;  %2373 = vrot.lane.b32.xlu0 %v2372_v54, %s2520_s19  ;;  %v1251_v54 = vadd.f32 %v3722_v49, %v3778_v15  ;;  %v1414_v17 = vadd.f32 %v3728_v37, %v3778_v15 }
 0x30a   : > { %v3807_v47 = vmax.f32 %v1402_v26, %v1450_v60  ;;  %v1454_v59 = vadd.f32 %v1453_v43, %v3760_v58  ;;  %v1294_v51 = vpop.f32.mrf.mxu0  ;;  %2378 = vrot.lane.b32.xlu1 %v2377_v63, %s2520_s19  ;;  %v1412_v60 = vadd.f32 %v3724_v48, %v3778_v15 }
 0x30b   : > { %v1295_v23 = vadd.f32 %v1294_v51, %v3760_v58  ;;  %v1455_v25 = vpop.f32.mrf.mxu1  ;;  %v2382_v61 = vpack.i.bf16 %v3801_v40, %v3799_v13  ;;  %v3825_v50 = vmax.f32 %v1245_v39, %v1293_v5  ;;  %v1105_v5 = vpop.permute.xlu1 %1104 }
 0x30c   : > { %v2387_v8 = vpack.i.bf16 %v3807_v47, %v3805_v57  ;;  %v1456_v33 = vadd.f32 %v1455_v25, %v3760_v58  ;;  %v1298_v20 = vpop.f32.mrf.mxu0  ;;  %v3831_v4 = vmax.f32 %v1406_v7, %v1454_v59  ;;  %v1253_v58 = vadd.f32 %v3726_v62, %v3778_v15 }
 0x30d   : > { %v3827_v19 = vmax.f32 %v1247_v3, %v1295_v23  ;;  %v1299_v38 = vadd.f32 %v1298_v20, %v3781_v45  ;;  %v1459_v27 = vpop.f32.mrf.mxu1  ;;  %2383 = vrot.lane.b32.xlu0 %v2382_v61, %s2520_s19  ;;  %v1259_v25 = vadd.f32 %v3734_v21, %v1060_v18  ;;  %v1257_v61 = vadd.f32 %v3730_v41, %v1060_v18 }
 0x30e   : > { %v3833_v34 = vmax.f32 %v1408_v31, %v1456_v33  ;;  %v1460_v0 = vadd.f32 %v1459_v27, %v3781_v45  ;;  %v1300_v16 = vpop.f32.mrf.mxu0  ;;  %2388 = vrot.lane.b32.xlu1 %v2387_v8, %s2520_s19  ;;  %v1418_v8 = vadd.f32 %v3732_v6, %v1060_v18  ;;  %v1420_v33 = vadd.f32 %v3736_v10, %v1060_v18 }
 0x30f   : > { %v1301_v1 = vadd.f32 %v1300_v16, %v3781_v45  ;;  %v1461_v26 = vpop.f32.mrf.mxu1  ;;  %v2392_v63 = vpack.i.bf16 %v3827_v19, %v3825_v50  ;;  %v3851_v49 = vmax.f32 %v1251_v54, %v1299_v38  ;;  %v1110_v41 = vpop.permute.xlu1 %1109 }
 0x310   : > { %v2397_v62 = vpack.i.bf16 %v3833_v34, %v3831_v4  ;;  %v1462_v43 = vadd.f32 %v1461_v26, %v3781_v45  ;;  %v1304_v59 = vpop.f32.mrf.mxu0  ;;  %v3856_v23 = vmax.f32 %v1412_v60, %v1460_v0  ;;  %v1070_v0 = vpop.permute.xlu0 %1069 }
 0x311   : > { %v3853_v51 = vmax.f32 %v1253_v58, %v1301_v1  ;;  %v1305_v3 = vadd.f32 %v1304_v59, %v1100_v11  ;;  %v1465_v39 = vpop.f32.mrf.mxu1  ;;  %2393 = vrot.lane.b32.xlu0 %v2392_v63, %s2520_s19  ;;  %v1263_v63 = vadd.f32 %v3738_v2, %v1065_v12 }
 0x312   : > { %v3858_v48 = vmax.f32 %v1414_v17, %v1462_v43  ;;  %v1466_v37 = vadd.f32 %v1465_v39, %v1100_v11  ;;  %v1306_v15 = vpop.f32.mrf.mxu0  ;;  %2398 = vrot.lane.b32.xlu1 %v2397_v62, %s2520_s19  ;;  %v1424_v62 = vadd.f32 %v3740_v9, %v1065_v12  ;;  %v1426_v43 = vadd.f32 %v3744_v30, %v1065_v12 }
 0x313   : > { %v2402_v45 = vpack.i.bf16 %v3853_v51, %v3851_v49  ;;  %v1307_v7 = vadd.f32 %v1306_v15, %v1100_v11  ;;  %v1467_v31 = vpop.f32.mrf.mxu1  ;;  %v3869_v16 = vmax.f32 %v1257_v61, %v1305_v3  ;;  %v1271_v30 = vadd.f32 %v3750_v42, %v1070_v0 }
 0x314   : > { %v2407_v20 = vpack.i.bf16 %v3858_v48, %v3856_v23  ;;  %v1468_v38 = vadd.f32 %v1467_v31, %v1100_v11  ;;  %v1310_v27 = vpop.f32.mrf.mxu0  ;;  %v3874_v1 = vmax.f32 %v1418_v8, %v1466_v37  ;;  %v1265_v11 = vadd.f32 %v3742_v29, %v1065_v12  ;;  %v1075_v12 = vpop.permute.xlu0 %1074 }
 0x315   : > { %v3871_v21 = vmax.f32 %v1259_v25, %v1307_v7  ;;  %v1311_v58 = vadd.f32 %v1310_v27, %v1105_v5  ;;  %v1471_v54 = vpop.f32.mrf.mxu1  ;;  %2403 = vrot.lane.b32.xlu0 %v2402_v45, %s2520_s19  ;;  %v1269_v7 = vadd.f32 %v3746_v32, %v1070_v0 }
 0x316   : > { %v3876_v6 = vmax.f32 %v1420_v33, %v1468_v38  ;;  %v1472_v10 = vadd.f32 %v1471_v54, %v1105_v5  ;;  %v1312_v18 = vpop.f32.mrf.mxu0  ;;  %2408 = vrot.lane.b32.xlu1 %v2407_v20, %s2520_s19  ;;  %v1430_v33 = vadd.f32 %v3748_v22, %v1070_v0  ;;  %v1432_v20 = vadd.f32 %v3752_v44, %v1070_v0  ;;  %v1115_v38 = vpop.permute.xlu1 %1114 }
 0x317   : > { %v2412_v26 = vpack.i.bf16 %v3871_v21, %v3869_v16  ;;  %v1313_v60 = vadd.f32 %v1312_v18, %v1105_v5  ;;  %v1473_v17 = vpop.f32.mrf.mxu1  ;;  %v3887_v37 = vmax.f32 %v1263_v63, %v1311_v58  ;;  %v1277_v0 = vadd.f32 %v3762_v46, %v1075_v12 }
 0x318   : > { %v2417_v59 = vpack.i.bf16 %v3876_v6, %v3874_v1  ;;  %v1474_v3 = vadd.f32 %v1473_v17, %v1105_v5  ;;  %v1316_v39 = vpop.f32.mrf.mxu0  ;;  %v3892_v2 = vmax.f32 %v1424_v62, %v1472_v10  ;;  %v1275_v63 = vadd.f32 %v3754_v24, %v1075_v12 }
 0x319   : > { %v3889_v15 = vmax.f32 %v1265_v11, %v1313_v60  ;;  %v1317_v29 = vadd.f32 %v1316_v39, %v1110_v41  ;;  %v1477_v25 = vpop.f32.mrf.mxu1  ;;  %2413 = vrot.lane.b32.xlu0 %v2412_v26, %s2520_s19  ;;  %v1436_v62 = vadd.f32 %v3758_v53, %v1075_v12 }
 0x31a   : > { %v3894_v45 = vmax.f32 %v1426_v43, %v1474_v3  ;;  %v1478_v9 = vadd.f32 %v1477_v25, %v1110_v41  ;;  %v1318_v61 = vpop.f32.mrf.mxu0  ;;  %2418 = vrot.lane.b32.xlu1 %v2417_v59, %s2520_s19  ;;  %v1438_v43 = vadd.f32 %v3764_v36, %v1075_v12 }
 0x31b   : > { %v2422_v5 = vpack.i.bf16 %v3889_v15, %v3887_v37  ;;  %v1319_v31 = vadd.f32 %v1318_v61, %v1110_v41  ;;  %v1479_v8 = vpop.f32.mrf.mxu1  ;;  %v3905_v10 = vmax.f32 %v1269_v7, %v1317_v29 }
 0x31c   : > { %v2427_v27 = vpack.i.bf16 %v3894_v45, %v3892_v2  ;;  %v1480_v58 = vadd.f32 %v1479_v8, %v1110_v41  ;;  %v1322_v54 = vpop.f32.mrf.mxu0  ;;  %v3910_v32 = vmax.f32 %v1430_v33, %v1478_v9 }
 0x31d   : > { %v3907_v42 = vmax.f32 %v1271_v30, %v1319_v31  ;;  %v1323_v18 = vadd.f32 %v1322_v54, %v1115_v38  ;;  %v1483_v11 = vpop.f32.mrf.mxu1  ;;  %2423 = vrot.lane.b32.xlu0 %v2422_v5, %s2520_s19 }
 0x31e   : > { %v3912_v26 = vmax.f32 %v1432_v20, %v1480_v58  ;;  %v1484_v22 = vadd.f32 %v1483_v11, %v1115_v38  ;;  %v1324_v44 = vpop.f32.mrf.mxu0  ;;  %2428 = vrot.lane.b32.xlu1 %v2427_v27, %s2520_s19 }
 0x31f   : > { %v2432_v41 = vpack.i.bf16 %v3907_v42, %v3905_v10  ;;  %v1325_v60 = vadd.f32 %v1324_v44, %v1115_v38  ;;  %v1485_v17 = vpop.f32.mrf.mxu1  ;;  %v3923_v39 = vmax.f32 %v1275_v63, %v1323_v18 }
 0x320   : > { %v2437_v59 = vpack.i.bf16 %v3912_v26, %v3910_v32  ;;  %v1486_v3 = vadd.f32 %v1485_v17, %v1115_v38  ;;  %v3928_v46 = vmax.f32 %v1436_v62, %v1484_v22 }
 0x321   : > { %v3925_v29 = vmax.f32 %v1277_v0, %v1325_v60  ;;  %2433 = vrot.lane.b32.xlu0 %v2432_v41, %s2520_s19 }
 0x322   : > { %v3930_v25 = vmax.f32 %v1438_v43, %v1486_v3  ;;  %2438 = vrot.lane.b32.xlu1 %v2437_v59, %s2520_s19 }
 0x323   : > { %v2442_v24 = vpack.i.bf16 %v3925_v29, %v3923_v39 }
 0x324   : > { %v2447_v53 = vpack.i.bf16 %v3930_v25, %v3928_v46 }
 0x325   : > { %2443 = vrot.lane.b32.xlu0 %v2442_v24, %s2520_s19 }
 0x326   : > { %2448 = vrot.lane.b32.xlu1 %v2447_v53, %s2520_s19  ;;  %s2045_s19 = scalar_lea.sflag [#allocation3], %s294_s24 }
 0x37b   : > { %v2374_v36 = vpop.permute.xlu0 %2373 }
 0x37c   : > { %v2376_v9 = vunpack.i.h.bf16 %v2374_v36  ;;  %v2375_v61 = vunpack.i.l.bf16 %v2374_v36  ;;  %v2379_v30 = vpop.permute.xlu1 %2378 }
 0x37d   : > { %v2381_v12 = vunpack.i.h.bf16 %v2379_v30  ;;  %v2380_v5 = vunpack.i.l.bf16 %v2379_v30 }
 0x37e   : > { %v1600_v7 = vsel %vm951_vm2, %v2375_v61, %v2376_v9 }
 0x37f   : > { %v1584_v31 = vsel %vm951_vm2, %v2380_v5, %v2381_v12  ;;  %v2384_v8 = vpop.permute.xlu0 %2383  ;;  %v1592_v33 = vsel %vm951_vm2, %v2376_v9, %v2380_v5  ;;  %v1608_v20 = vsel %vm951_vm2, %v2381_v12, %v2375_v61  ;;  %v1616_v11 = vmax.f32 %v3783_v52, %v1600_v7 }
 0x380   : > { %v1618_v38 = vmax.f32 %v3787_v14, %v1584_v31  ;;  %v2386_v27 = vunpack.i.h.bf16 %v2384_v8  ;;  %v2385_v58 = vunpack.i.l.bf16 %v2384_v8  ;;  %v2389_v54 = vpop.permute.xlu1 %2388  ;;  %v1617_v18 = vmax.f32 %v3785_v35, %v1592_v33 }
 0x381   : > { %v2391_v22 = vunpack.i.h.bf16 %v2389_v54  ;;  %v2390_v44 = vunpack.i.l.bf16 %v2389_v54  ;;  %v1619_v0 = vmax.f32 %v3789_v55, %v1608_v20 }
 0x382   : > { %1776 = vmatprep.mubr.f32.mxu0 %v1617_v18  ;;  %v1601_v41 = vsel %vm951_vm2, %v2385_v58, %v2386_v27 }
 0x383   : > { %1881 = vmatprep.mubr.f32.mxu1 %v1619_v0  ;;  %v2394_v63 = vpop.permute.xlu0 %2393  ;;  %1777 = vmatmul.mubr.f32.vlgmr.msra.gmra.mxu0 %v1616_v11  ;;  %v1593_v14 = vsel %vm951_vm2, %v2386_v27, %v2390_v44  ;;  %v1609_v60 = vsel %vm951_vm2, %v2391_v22, %v2385_v58  ;;  %v1620_v3 = vmax.f32 %v3799_v13, %v1601_v41 }
 0x384   : > { %v2396_v35 = vunpack.i.h.bf16 %v2394_v63  ;;  %v2395_v17 = vunpack.i.l.bf16 %v2394_v63  ;;  %1882 = vmatmul.mubr.f32.vlgmr.msra.gmra.mxu1 %v1618_v38  ;;  %v2399_v52 = vpop.permute.xlu1 %2398  ;;  %v1621_v62 = vmax.f32 %v3801_v40, %v1593_v14  ;;  %v1623_v55 = vmax.f32 %v3807_v47, %v1609_v60 }
 0x385   : > { %v2401_v43 = vunpack.i.h.bf16 %v2399_v52  ;;  %v2400_v59 = vunpack.i.l.bf16 %v2399_v52  ;;  %v1585_v24 = vsel %vm951_vm2, %v2390_v44, %v2391_v22 }
 0x386   : > { %1781 = vmatprep.mubr.f32.mxu0 %v1621_v62  ;;  %1886 = vmatprep.mubr.f32.mxu1 %v1623_v55  ;;  %v1622_v53 = vmax.f32 %v3805_v57, %v1585_v24  ;;  %v1602_v36 = vsel %vm951_vm2, %v2395_v17, %v2396_v35 }
 0x387   : > { %v2404_v9 = vpop.permute.xlu0 %2403  ;;  %1782 = vmatmul.mubr.f32.gmra.mxu0 %v1620_v3  ;;  %v1594_v40 = vsel %vm951_vm2, %v2396_v35, %v2400_v59  ;;  %v1610_v47 = vsel %vm951_vm2, %v2401_v43, %v2395_v17  ;;  %v1586_v13 = vsel %vm951_vm2, %v2400_v59, %v2401_v43  ;;  %v1624_v8 = vmax.f32 %v3825_v50, %v1602_v36 }
 0x388   : > { %v2406_v61 = vunpack.i.h.bf16 %v2404_v9  ;;  %v2405_v30 = vunpack.i.l.bf16 %v2404_v9  ;;  %1887 = vmatmul.mubr.f32.gmra.mxu1 %v1622_v53  ;;  %v2409_v12 = vpop.permute.xlu1 %2408  ;;  %v1625_v57 = vmax.f32 %v3827_v19, %v1594_v40  ;;  %v1627_v5 = vmax.f32 %v3833_v34, %v1610_v47 }
 0x389   : > { %v2411_v7 = vunpack.i.h.bf16 %v2409_v12  ;;  %v2410_v31 = vunpack.i.l.bf16 %v2409_v12  ;;  %v1626_v33 = vmax.f32 %v3831_v4, %v1586_v13 }
 0x38a   : > { %1786 = vmatprep.mubr.f32.mxu0 %v1625_v57  ;;  %1891 = vmatprep.mubr.f32.mxu1 %v1627_v5  ;;  %v1603_v20 = vsel %vm951_vm2, %v2405_v30, %v2406_v61 }
 0x38b   : > { %v2414_v38 = vpop.permute.xlu0 %2413  ;;  %1787 = vmatmul.mubr.f32.gmra.mxu0 %v1624_v8  ;;  %v1595_v27 = vsel %vm951_vm2, %v2406_v61, %v2410_v31  ;;  %v1611_v19 = vsel %vm951_vm2, %v2411_v7, %v2405_v30  ;;  %v1587_v34 = vsel %vm951_vm2, %v2410_v31, %v2411_v7  ;;  %v1628_v44 = vmax.f32 %v3851_v49, %v1603_v20 }
 0x38c   : > { %v2416_v58 = vunpack.i.h.bf16 %v2414_v38  ;;  %v2415_v50 = vunpack.i.l.bf16 %v2414_v38  ;;  %1892 = vmatmul.mubr.f32.gmra.mxu1 %v1626_v33  ;;  %v2419_v4 = vpop.permute.xlu1 %2418  ;;  %v1629_v54 = vmax.f32 %v3853_v51, %v1595_v27  ;;  %v1631_v18 = vmax.f32 %v3858_v48, %v1611_v19 }
 0x38d   : > { %v2421_v11 = vunpack.i.h.bf16 %v2419_v4  ;;  %v2420_v22 = vunpack.i.l.bf16 %v2419_v4  ;;  %v1630_v0 = vmax.f32 %v3856_v23, %v1587_v34  ;;  %v1955_v4 = vld [vmem:[%s4116_s6 + $0x8] sm:$0xff] }
 0x38e   : > { %1791 = vmatprep.mubr.f32.mxu0 %v1629_v54  ;;  %1896 = vmatprep.mubr.f32.mxu1 %v1631_v18  ;;  %v1604_v41 = vsel %vm951_vm2, %v2415_v50, %v2416_v58  ;;  %v1954_v54 = vld [vmem:[%s4116_s6] sm:$0xff] }
 0x38f   : > { %v2424_v63 = vpop.permute.xlu0 %2423  ;;  %1792 = vmatmul.mubr.f32.gmra.mxu0 %v1628_v44  ;;  %v1596_v14 = vsel %vm951_vm2, %v2416_v58, %v2420_v22  ;;  %v1612_v51 = vsel %vm951_vm2, %v2421_v11, %v2415_v50  ;;  %v1588_v48 = vsel %vm951_vm2, %v2420_v22, %v2421_v11  ;;  %v1632_v55 = vmax.f32 %v3869_v16, %v1604_v41  ;;  %v1961_v50 = vld [vmem:[%s4116_s6 + $0x38] sm:$0xff] }
 0x390   : > { %v2426_v60 = vunpack.i.h.bf16 %v2424_v63  ;;  %v2425_v49 = vunpack.i.l.bf16 %v2424_v63  ;;  %1897 = vmatmul.mubr.f32.gmra.mxu1 %v1630_v0  ;;  %v2429_v23 = vpop.permute.xlu1 %2428  ;;  %v1633_v35 = vmax.f32 %v3871_v21, %v1596_v14  ;;  %v1635_v17 = vmax.f32 %v3876_v6, %v1612_v51  ;;  %2285 = vmatpush3.msra.mxu0 %v1961_v50 }
 0x391   : > { %v2431_v52 = vunpack.i.h.bf16 %v2429_v23  ;;  %v2430_v62 = vunpack.i.l.bf16 %v2429_v23  ;;  %v1634_v43 = vmax.f32 %v3874_v1, %v1588_v48  ;;  %2286 = vmatprep.subr.mxu0 %v2522_v28 }
 0x392   : > { %1796 = vmatprep.mubr.f32.mxu0 %v1633_v35  ;;  %1901 = vmatprep.mubr.f32.mxu1 %v1635_v17  ;;  %v1605_v59 = vsel %vm951_vm2, %v2425_v49, %v2426_v60 }
 0x393   : > { %v2434_v3 = vpop.permute.xlu0 %2433  ;;  %1797 = vmatmul.mubr.f32.gmra.mxu0 %v1632_v55  ;;  %v1597_v24 = vsel %vm951_vm2, %v2426_v60, %v2430_v62  ;;  %v1613_v21 = vsel %vm951_vm2, %v2431_v52, %v2425_v49  ;;  %v1589_v6 = vsel %vm951_vm2, %v2430_v62, %v2431_v52  ;;  %v1636_v13 = vmax.f32 %v3887_v37, %v1605_v59 }
 0x394   : > { %v2436_v53 = vunpack.i.h.bf16 %v2434_v3  ;;  %v2435_v16 = vunpack.i.l.bf16 %v2434_v3  ;;  %1902 = vmatmul.mubr.f32.gmra.mxu1 %v1634_v43  ;;  %v2439_v1 = vpop.permute.xlu1 %2438  ;;  %v1637_v36 = vmax.f32 %v3889_v15, %v1597_v24  ;;  %v1639_v9 = vmax.f32 %v3894_v45, %v1613_v21  ;;  %2287 = vmatpush3.msra.mxu0 %v1960_v56  ;;  %v2157_v56 = vld [vmem:[%s4117_s7] ss:$0 sm:$0xff] }
 0x395   : > { %v2441_v40 = vunpack.i.h.bf16 %v2439_v1  ;;  %v2440_v47 = vunpack.i.l.bf16 %v2439_v1  ;;  %v1638_v61 = vmax.f32 %v3892_v2, %v1589_v6  ;;  %2288 = vmatprep.subr.mxu0 %v2522_v28 }
 0x396   : > { %1801 = vmatprep.mubr.f32.mxu0 %v1637_v36  ;;  %1906 = vmatprep.mubr.f32.mxu1 %v1639_v9  ;;  %v1606_v30 = vsel %vm951_vm2, %v2435_v16, %v2436_v53 }
 0x397   : > { %v2444_v12 = vpop.permute.xlu0 %2443  ;;  %1802 = vmatmul.mubr.f32.gmra.mxu0 %v1636_v13  ;;  %v1598_v57 = vsel %vm951_vm2, %v2436_v53, %v2440_v47  ;;  %v1614_v15 = vsel %vm951_vm2, %v2441_v40, %v2435_v16  ;;  %v1590_v45 = vsel %vm951_vm2, %v2440_v47, %v2441_v40  ;;  %v1640_v20 = vmax.f32 %v3905_v10, %v1606_v30 }
 0x398   : > { %v2446_v5 = vunpack.i.h.bf16 %v2444_v12  ;;  %v2445_v37 = vunpack.i.l.bf16 %v2444_v12  ;;  %1907 = vmatmul.mubr.f32.gmra.mxu1 %v1638_v61  ;;  %v2449_v2 = vpop.permute.xlu1 %2448  ;;  %v1641_v7 = vmax.f32 %v3907_v42, %v1598_v57  ;;  %v1643_v31 = vmax.f32 %v3912_v26, %v1614_v15 }
 0x399   : > { %v2451_v8 = vunpack.i.h.bf16 %v2449_v2  ;;  %v2450_v33 = vunpack.i.l.bf16 %v2449_v2  ;;  %v1642_v38 = vmax.f32 %v3910_v32, %v1590_v45 }
 0x39a   : > { %1806 = vmatprep.mubr.f32.mxu0 %v1641_v7  ;;  %1911 = vmatprep.mubr.f32.mxu1 %v1643_v31  ;;  %v1607_v27 = vsel %vm951_vm2, %v2445_v37, %v2446_v5 }
 0x39b   : > { %1807 = vmatmul.mubr.f32.gmra.mxu0 %v1640_v20  ;;  %v1599_v19 = vsel %vm951_vm2, %v2446_v5, %v2450_v33  ;;  %v1615_v42 = vsel %vm951_vm2, %v2451_v8, %v2445_v37  ;;  %v1591_v26 = vsel %vm951_vm2, %v2450_v33, %v2451_v8  ;;  %v1644_v58 = vmax.f32 %v3923_v39, %v1607_v27  ;;  %v1959_v39 = vld [vmem:[%s4116_s6 + $0x28] sm:$0xff] }
 0x39c   : > { %1912 = vmatmul.mubr.f32.gmra.mxu1 %v1642_v38  ;;  %v1645_v10 = vmax.f32 %v3925_v29, %v1599_v19  ;;  %v1647_v32 = vmax.f32 %v3930_v25, %v1615_v42  ;;  %v1646_v34 = vmax.f32 %v3928_v46, %v1591_v26  ;;  %v1958_v29 = vld [vmem:[%s4116_s6 + $0x20] sm:$0xff]  ;;  %2289 = vmatpush3.msra.mxu0 %v1959_v39  ;;  %v1957_v46 = vld [vmem:[%s4116_s6 + $0x18] sm:$0xff]  ;;  %v1956_v25 = vld [vmem:[%s4116_s6 + $0x10] sm:$0xff] }
 0x39d   : > { %2290 = vmatprep.subr.mxu0 %v2522_v28 }
 0x39e   : > { %1811 = vmatprep.mubr.f32.mxu0 %v1645_v10  ;;  %1916 = vmatprep.mubr.f32.mxu1 %v1647_v32 }
 0x39f   : > { %1812 = vmatmul.mubr.f32.gmra.mxu0 %v1644_v58 }
 0x3a0   : > { %1917 = vmatmul.mubr.f32.gmra.mxu1 %v1646_v34  ;;  %2300 = vmatprep.mubr.msk.f32.mxu0 %vm2523_vm5, %v2522_v28 }
 0x3a1   : > { %2291 = vmatpush3.msra.mxu0 %v1958_v29 }
 0x3a2   : > { %2292 = vmatprep.subr.mxu0 %v2522_v28 }
 0x3a3   : > { %2293 = vmatpush3.msra.mxu0 %v1957_v46 }
 0x3a4   : > { %2294 = vmatprep.subr.mxu0 %v2522_v28 }
 0x3a5   : > { %2295 = vmatpush3.msra.mxu0 %v1956_v25 }
 0x3a6   : > { %2296 = vmatprep.subr.mxu0 %v2522_v28 }
 0x3a7   : > { %2297 = vmatpush3.msra.mxu0 %v1955_v4 }
 0x3a8   : > { %2298 = vmatprep.subr.mxu0 %v2522_v28 }
 0x3a9   : > { %2299 = vmatpush3.msra.mxu0 %v1954_v54 }
 0x443   : > { %v2195_v18 = vpop.f32.mrf.mxu0 }
 0x444   : > { %v2251_v11 = vpop.f32.mrf.mxu1 }
 0x445   : > { %v2196_v22 = vpop.f32.mrf.mxu0 }
 0x446   : > { %v2197_v44 = vadd.f32 %v2196_v22, %v2195_v18  ;;  %v2252_v0 = vpop.f32.mrf.mxu1 }
 0x447   : > { %v2253_v41 = vadd.f32 %v2252_v0, %v2251_v11  ;;  %v2198_v63 = vpop.f32.mrf.mxu0 }
 0x448   : > { %v2254_v14 = vpop.f32.mrf.mxu1 }
 0x449   : > { %v1884_v51 = vadd.f32 %v2253_v41, %v2197_v44  ;;  %v2199_v48 = vpop.f32.mrf.mxu0 }
 0x44a   : > { %v2200_v60 = vadd.f32 %v2199_v48, %v2198_v63  ;;  %v2255_v49 = vpop.f32.mrf.mxu1 }
 0x44b   : > { %v2256_v23 = vadd.f32 %v2255_v49, %v2254_v14  ;;  %1922 = vxpose.xlu0.b32.start [1/8] (short) (narrow) %v1884_v51, 8  ;;  %v2201_v35 = vpop.f32.mrf.mxu0 }
 0x44c   : > { %v2257_v17 = vpop.f32.mrf.mxu1 }
 0x44d   : > { %v1889_v52 = vadd.f32 %v2256_v23, %v2200_v60  ;;  %v2202_v62 = vpop.f32.mrf.mxu0 }
 0x44e   : > { %v2203_v28 = vadd.f32 %v2202_v62, %v2201_v35  ;;  %v2258_v55 = vpop.f32.mrf.mxu1 }
 0x44f   : > { %v2259_v43 = vadd.f32 %v2258_v55, %v2257_v17  ;;  %1923 = vxpose.xlu0.b32.cont [2/8] (short) (narrow) %v1889_v52, 8  ;;  %v2204_v59 = vpop.f32.mrf.mxu0 }
 0x450   : > { %v2260_v3 = vpop.f32.mrf.mxu1 }
 0x451   : > { %v1894_v24 = vadd.f32 %v2259_v43, %v2203_v28  ;;  %v2205_v21 = vpop.f32.mrf.mxu0 }
 0x452   : > { %v2206_v6 = vadd.f32 %v2205_v21, %v2204_v59  ;;  %v2261_v53 = vpop.f32.mrf.mxu1 }
 0x453   : > { %v2262_v16 = vadd.f32 %v2261_v53, %v2260_v3  ;;  %1924 = vxpose.xlu0.b32.cont [3/8] (short) (narrow) %v1894_v24, 8  ;;  %v2207_v1 = vpop.f32.mrf.mxu0 }
 0x454   : > { %v2263_v36 = vpop.f32.mrf.mxu1 }
 0x455   : > { %v1899_v9 = vadd.f32 %v2262_v16, %v2206_v6  ;;  %v2208_v40 = vpop.f32.mrf.mxu0 }
 0x456   : > { %v2209_v47 = vadd.f32 %v2208_v40, %v2207_v1  ;;  %v2264_v13 = vpop.f32.mrf.mxu1 }
 0x457   : > { %v2265_v61 = vadd.f32 %v2264_v13, %v2263_v36  ;;  %1925 = vxpose.xlu0.b32.cont [4/8] (short) (narrow) %v1899_v9, 8  ;;  %v2210_v30 = vpop.f32.mrf.mxu0 }
 0x458   : > { %v2266_v12 = vpop.f32.mrf.mxu1 }
 0x459   : > { %v1904_v57 = vadd.f32 %v2265_v61, %v2209_v47  ;;  %v2211_v15 = vpop.f32.mrf.mxu0 }
 0x45a   : > { %v2212_v45 = vadd.f32 %v2211_v15, %v2210_v30  ;;  %v2267_v5 = vpop.f32.mrf.mxu1 }
 0x45b   : > { %v2268_v37 = vadd.f32 %v2267_v5, %v2266_v12  ;;  %1926 = vxpose.xlu0.b32.cont [5/8] (short) (narrow) %v1904_v57, 8  ;;  %v2213_v2 = vpop.f32.mrf.mxu0 }
 0x45c   : > { %v2269_v7 = vpop.f32.mrf.mxu1 }
 0x45d   : > { %v1909_v31 = vadd.f32 %v2268_v37, %v2212_v45  ;;  %v2214_v8 = vpop.f32.mrf.mxu0 }
 0x45e   : > { %v2215_v33 = vadd.f32 %v2214_v8, %v2213_v2  ;;  %v2270_v20 = vpop.f32.mrf.mxu1 }
 0x45f   : > { %v2271_v38 = vadd.f32 %v2270_v20, %v2269_v7  ;;  %1927 = vxpose.xlu0.b32.cont [6/8] (short) (narrow) %v1909_v31, 8  ;;  %v2216_v27 = vpop.f32.mrf.mxu0 }
 0x460   : > { %v2272_v19 = vpop.f32.mrf.mxu1 }
 0x461   : > { %v1914_v42 = vadd.f32 %v2271_v38, %v2215_v33  ;;  %v2217_v26 = vpop.f32.mrf.mxu0 }
 0x462   : > { %v2218_v10 = vadd.f32 %v2217_v26, %v2216_v27  ;;  %v2273_v32 = vpop.f32.mrf.mxu1 }
 0x463   : > { %v2274_v34 = vadd.f32 %v2273_v32, %v2272_v19  ;;  %1928 = vxpose.xlu0.b32.cont [7/8] (short) (narrow) %v1914_v42, 8 }
 0x465   : > { %v1919_v58 = vadd.f32 %v2274_v34, %v2218_v10 }
 0x467   : > { %1929 = vxpose.xlu0.b32.end [8/8] (short) (narrow) %v1919_v58, 8 }
 0x4c7   : > { %v1938_v50 = vpop.trf.xlu0 }
 0x4c8   : > { %2301 = vmatmul.mubr.msk.f32.vlgmr.msra.gmra.mxu0 %vm1969_vm6, %v1938_v50 }
 0x588   : > { %v2039_v39 = vpop.f32.mrf.mxu0 }
 0x589   : > { %v2040_v29 = vadd.f32 %v2157_v56, %v2039_v39 }
 0x58a   : > { %v2302_v46 = vpop.f32.mrf.mxu0 }
 0x58b   : > { %2043 = vst [vmem:[%s296_s17] sm:$0xff] %v2040_v29 }
 0x58c   : > { %2465 = shalt.err (!%p2462_p3)
}
 0x58d   : > { %s2466_s26 = scalar_lea.hbm %s4075_s21, 128  ;;  %s2470_s13 = scalar_lea.hbm %s4118_s8, 256 }
 0x58e   : > { %p2467_p4 = scmp.ne.s32.totalorder %s4075_s21, %s2466_s26  ;;  %p2471_p9 = scmp.lt.s32.totalorder %s4075_s21, %s4118_s8 }
 0x58f   : > { %p2472_p10 = scmp.lt.s32.totalorder %s2470_s13, %s2466_s26 }
 0x590   : > { %p2468_p7 = pnand %p2467_p4, %p2608_p5 }
 0x591   : > { %p2473_p11 = por %p2472_p10, %p2471_p9 }
 0x592   : > { %p2469_p8 = pneg %p2468_p7 }
 0x594   : > { %p2474_p12 = pnand %p2473_p11, %p2469_p8 }
 0x596   : > { %2477 = shalt.err (!%p2474_p12)
}
 0x597   : > { %2303 = dma.vmem_to_hbm [thread:$0]  (%p2608_p5), %s2059_s18, 128, %s4075_s21, %s2045_s19  }
 0x598 PF: > { %p2309_p13 = scmp.ge.s32.totalorder %s2512_s30, 2  ;;  %s2070_s20 = sand.u32 1, %s2500_s27  }
 0x599   : > { %s2071_s22 = scalar_lea.sflag [#allocation3], %s2070_s20 }
 0x59a   : > { %p2306_p0 = pnand %p2309_p13, %p2612_p6 }
 0x59c   : > { %p2307_p1 = pneg %p2306_p0 }
 0x59e   : > { %2495 = dma.done.wait (%p2307_p1), %s2071_s22, 128  }
 0x59f   : > { %2497 = vsyncadd (%p2307_p1), %s2071_s22, 4294967168  ;;  %p18_p2 = scmp.ge.s32.totalorder %s2595_s11, 4   ;;  %s4176_s27 = smov %s2504_s28 }
 0x5a0   : > { %s4177_s28 = smov %s2508_s29  ;;  %s4178_s29 = smov %s2606_s14 }
 0x5a1   : > { %s4179_s30 = smov %s2595_s11  ;;  %20 = sbr.rel (!%p18_p2) target bundleno = 3 (0x3), region = 89 }
 0x5a6   :  { %2076 = vsyncpa [#allocation3], 1 }
 0x5a7   :  { %2078 = vsyncpa [#allocation3 + $0x1], 1 }

</bundles_post_ra>
